<compile_context>
chip_gen: v6e
topology: v6e:2x2x1
jax: 0.10.0
libtpu: 0.0.40
codegen_flags: <defaults>
</compile_context>

<pallas_src>
import jax
import jax.numpy as jnp
from jax.experimental import pallas as pl
from jax.experimental.pallas import tpu as pltpu


# ----------------------------------------------------------------------------
# Pallas kernel: whole forward pass fused (4 matmuls + LSTM gate math) for one
# batch tile.  Weights fit comfortably in VMEM (~0.9 MiB after bf16 + pruning).
# ----------------------------------------------------------------------------
def net_kernel(x_ref, wenc_ref, benc_ref,
               wih1_ref, b1_ref,
               wih2_ref, b2_ref,
               wdec_ref, bdec_ref, out_ref):
    x = x_ref[...]                                                # (TB, O) bf16

    # ---- encode: Linear + (Dropout = identity in eval) + ReLU ----
    em = jnp.dot(x, wenc_ref[...], preferred_element_type=jnp.float32)
    em = jnp.maximum(em + benc_ref[...], 0.0)                     # (TB, E) f32

    # ---- 2-layer LSTM, seq_len = 1, zero initial (h, c) ----
    # wih columns are pre-pruned to [i | g | o]; i- and o-gate columns (and
    # matching bias entries) are pre-scaled by 0.5 so
    #   sigmoid(z) == 0.5 * (1 + tanh(z_prescaled)).
    def lstm_layer(inp, wih, bias):
        hdim = wih.shape[1] // 3
        gates = jnp.dot(inp.astype(jnp.bfloat16), wih,
                        preferred_element_type=jnp.float32) + bias  # (TB, 3H)
        i_g = 0.5 * (1.0 + jnp.tanh(gates[:, 0 * hdim:1 * hdim]))
        g_g = jnp.tanh(gates[:, 1 * hdim:2 * hdim])
        o_g = 0.5 * (1.0 + jnp.tanh(gates[:, 2 * hdim:3 * hdim]))
        c = i_g * g_g
        return o_g * jnp.tanh(c)

    h1 = lstm_layer(em, wih1_ref[...], b1_ref[...])
    h2 = lstm_layer(h1, wih2_ref[...], b2_ref[...])

    # ---- decode: 2*(sigmoid(z) - 0.5) == tanh(z/2); the 0.5 is folded into
    # w_dec / b_dec at prep time, so the epilogue is a single tanh. ----
    dec = jnp.dot(h2.astype(jnp.bfloat16), wdec_ref[...],
                  preferred_element_type=jnp.float32) + bdec_ref[...]
    out_ref[...] = jnp.tanh(dec)


def net_forward(x, kparams, *, tile_b=None):
    B, O = x.shape
    if tile_b is None:
        # Small batch -> one grid step (B=32 easily fits as a single block);
        # large batch -> 256-row tiles (multiple of 16 for bf16 tiling, fills
        # the MXU M dimension, and >1 tile shards across v7x TensorCores).
        tile_b = B if B <= 256 else 256
    assert B % tile_b == 0, "pad batch to a multiple of tile_b"
    assert tile_b == B or tile_b % 16 == 0, "tile_b should be a multiple of 16 (bf16 tiling)"

    # Cast the streamed input once in the wrapper: halves HBM bytes per tile
    # and removes the per-tile in-kernel pack.
    x = x.astype(jnp.bfloat16)

    args = (x,
            kparams["w_enc"], kparams["b_enc"],
            kparams["w_ih1"], kparams["b1"],
            kparams["w_ih2"], kparams["b2"],
            kparams["w_dec"], kparams["b_dec"])

    def const_spec(a):
        # Constant block index across the batch grid axis + single buffering:
        # weights/biases are DMA'd once and stay VMEM-resident (no second copy,
        # no per-step re-DMA).
        return pl.BlockSpec(a.shape, lambda i: (0,) * a.ndim,
                            pipeline_mode=pl.Buffered(1))

    in_specs = ([pl.BlockSpec((tile_b, O), lambda i: (i, 0))]
                + [const_spec(a) for a in args[1:]])
    out_spec = pl.BlockSpec((tile_b, O), lambda i: (i, 0))

    return pl.pallas_call(
        net_kernel,
        out_shape=jax.ShapeDtypeStruct((B, O), jnp.float32),
        grid_spec=pltpu.PrefetchScalarGridSpec(
            num_scalar_prefetch=0,
            grid=(pl.cdiv(B, tile_b),),
            in_specs=in_specs,
            out_specs=out_spec,
        ),
        compiler_params=pltpu.CompilerParams(
            dimension_semantics=("parallel",)),   # batch tiles -> v7x megacore
    )(*args)


# ----------------------------------------------------------------------------
# Deterministic parameter init (PyTorch-style uniform ranges), weights stored
# transposed as (in_features, out_features).  These are the "true" f32 params
# the reference uses; the kernel consumes a pruned/fused/scaled/bf16 view.
# ----------------------------------------------------------------------------
def init_params(key, onehot, emb):
    ks = jax.random.split(key, 12)

    def unif(k, shape, scale):
        return jax.random.uniform(k, shape, jnp.float32, -scale, scale)

    k_enc = 1.0 / jnp.sqrt(onehot)
    k_lstm = 1.0 / jnp.sqrt(emb)
    k_dec = 1.0 / jnp.sqrt(emb)

    return {
        "w_enc": unif(ks[0], (onehot, emb), k_enc),
        "b_enc": unif(ks[1], (1, emb), k_enc),
        "w_ih1": unif(ks[2], (emb, 4 * emb), k_lstm),   # gate order [i|f|g|o]
        "b_ih1": unif(ks[3], (1, 4 * emb), k_lstm),
        "b_hh1": unif(ks[4], (1, 4 * emb), k_lstm),
        "w_ih2": unif(ks[5], (emb, 4 * emb), k_lstm),
        "b_ih2": unif(ks[6], (1, 4 * emb), k_lstm),
        "b_hh2": unif(ks[7], (1, 4 * emb), k_lstm),
        "w_dec": unif(ks[8], (emb, onehot), k_dec),
        "b_dec": unif(ks[9], (1, onehot), k_dec),
    }


def prepare_kernel_params(p):
    """Prune the dead f-gate, fuse LSTM biases, pre-scale i/o-gate and decoder
    columns by 0.5 (sigmoid -> tanh rewrite), and cast weights to bf16."""
    E = p["w_enc"].shape[1]

    def prune_scale(a):
        # (*, 4E) -> (*, 3E): keep [i | g | o]; scale i and o by 0.5 so the
        # kernel can use sigmoid(z) = 0.5*(1 + tanh(z/2)).
        return jnp.concatenate(
            [0.5 * a[:, 0:E], a[:, 2 * E:3 * E], 0.5 * a[:, 3 * E:4 * E]],
            axis=1)

    return {
        "w_enc": p["w_enc"].astype(jnp.bfloat16),
        "b_enc": p["b_enc"],
        "w_ih1": prune_scale(p["w_ih1"]).astype(jnp.bfloat16),
        "b1":    prune_scale(p["b_ih1"] + p["b_hh1"]),
        "w_ih2": prune_scale(p["w_ih2"]).astype(jnp.bfloat16),
        "b2":    prune_scale(p["b_ih2"] + p["b_hh2"]),
        "w_dec": (0.5 * p["w_dec"]).astype(jnp.bfloat16),  # 0.5 exact in bf16
        "b_dec": 0.5 * p["b_dec"],
    }


# Pure-JAX f32 reference: exact eval-mode math of the original PyTorch module.
def net_reference(x, p):
    em = jnp.maximum(x @ p["w_enc"] + p["b_enc"], 0.0)

    def layer(inp, wih, bih, bhh):
        h = wih.shape[1] // 4
        g = inp @ wih + bih + bhh
        i_g = jax.nn.sigmoid(g[:, :h])
        f_g = jax.nn.sigmoid(g[:, h:2 * h])          # multiplies c0 == 0
        g_g = jnp.tanh(g[:, 2 * h:3 * h])
        o_g = jax.nn.sigmoid(g[:, 3 * h:])
        c = f_g * 0.0 + i_g * g_g
        return o_g * jnp.tanh(c)

    h1 = layer(em, p["w_ih1"], p["b_ih1"], p["b_hh1"])
    h2 = layer(h1, p["w_ih2"], p["b_ih2"], p["b_hh2"])
    return 2.0 * (jax.nn.sigmoid(h2 @ p["w_dec"] + p["b_dec"]) - 0.5)


if __name__ == "__main__":
    B = 32         # batch: small -> processed as a single grid step
    ONEHOT = 128   # onehot_num
    EMB = 256      # embedding_size (fixed by the module)

    key = jax.random.PRNGKey(0)
    kx, kp = jax.random.split(key)
    x = jax.random.normal(kx, (B, ONEHOT), jnp.float32)
    params = init_params(kp, ONEHOT, EMB)
    kparams = prepare_kernel_params(params)

    out = net_forward(x, kparams)          # tile_b defaults to B (one tile)
    out = jax.block_until_ready(out)

    ref = net_reference(x, params)
    assert out.shape == (B, ONEHOT)
    # bf16 x / weights on the MXU (f32 accumulation) vs f32 reference.
    assert jnp.allclose(out, ref, atol=3e-2, rtol=3e-2), "mismatch vs reference"

    print("KERNEL_OK")
</pallas_src>

<mosaic_0001>
module attributes {stable_mosaic.version = 11 : i64} {
  func.func @net_kernel(%arg0: i32, %arg1: memref<32x128xbf16, #tpu.memory_space<vmem>>, %arg2: memref<128x256xbf16, #tpu.memory_space<vmem>>, %arg3: memref<1x256xf32, #tpu.memory_space<vmem>>, %arg4: memref<256x768xbf16, #tpu.memory_space<vmem>>, %arg5: memref<1x768xf32, #tpu.memory_space<vmem>>, %arg6: memref<256x768xbf16, #tpu.memory_space<vmem>>, %arg7: memref<1x768xf32, #tpu.memory_space<vmem>>, %arg8: memref<256x128xbf16, #tpu.memory_space<vmem>>, %arg9: memref<1x128xf32, #tpu.memory_space<vmem>>, %arg10: memref<32x128xf32, #tpu.memory_space<vmem>>) attributes {dimension_semantics = [#tpu.dimension_semantics<parallel>], iteration_bounds = array<i64: 1>, scalar_prefetch = 0 : i64, scratch_operands = 0 : i64, tpu.core_type = #tpu.core_type<tc>, window_params = [{transform_indices = @transform_0, window_bounds = array<i64: 32, 128>}, {pipeline_mode = #tpu.pipeline_mode<synchronous>, transform_indices = @transform_1, window_bounds = array<i64: 128, 256>}, {pipeline_mode = #tpu.pipeline_mode<synchronous>, transform_indices = @transform_2, window_bounds = array<i64: 1, 256>}, {pipeline_mode = #tpu.pipeline_mode<synchronous>, transform_indices = @transform_3, window_bounds = array<i64: 256, 768>}, {pipeline_mode = #tpu.pipeline_mode<synchronous>, transform_indices = @transform_4, window_bounds = array<i64: 1, 768>}, {pipeline_mode = #tpu.pipeline_mode<synchronous>, transform_indices = @transform_5, window_bounds = array<i64: 256, 768>}, {pipeline_mode = #tpu.pipeline_mode<synchronous>, transform_indices = @transform_6, window_bounds = array<i64: 1, 768>}, {pipeline_mode = #tpu.pipeline_mode<synchronous>, transform_indices = @transform_7, window_bounds = array<i64: 256, 128>}, {pipeline_mode = #tpu.pipeline_mode<synchronous>, transform_indices = @transform_8, window_bounds = array<i64: 1, 128>}, {transform_indices = @transform_9, window_bounds = array<i64: 32, 128>}]} {
    %c0 = arith.constant 0 : index
    %c0_0 = arith.constant 0 : index
    %0 = vector.load %arg1[%c0, %c0_0] : memref<32x128xbf16, #tpu.memory_space<vmem>>, vector<32x128xbf16>
    %c0_1 = arith.constant 0 : index
    %c0_2 = arith.constant 0 : index
    %1 = vector.load %arg2[%c0_1, %c0_2] : memref<128x256xbf16, #tpu.memory_space<vmem>>, vector<128x256xbf16>
    %cst = arith.constant dense<0.000000e+00> : vector<32x256xf32>
    %2 = tpu.matmul %0, %1, %cst {dimension_numbers = #tpu.dot_dimension_numbers<[1], [0], [0], [1], [0, 0, 1, 1], [], []>} : vector<32x128xbf16>, vector<128x256xbf16>, vector<32x256xf32> -> vector<32x256xf32>
    %c0_3 = arith.constant 0 : index
    %c0_4 = arith.constant 0 : index
    %3 = vector.load %arg3[%c0_3, %c0_4] : memref<1x256xf32, #tpu.memory_space<vmem>>, vector<1x256xf32>
    %4 = vector.broadcast %3 : vector<1x256xf32> to vector<32x256xf32>
    %5 = arith.addf %2, %4 : vector<32x256xf32>
    %cst_5 = arith.constant 0.000000e+00 : f32
    %6 = vector.broadcast %cst_5 : f32 to vector<32x256xf32>
    %7 = arith.maximumf %5, %6 : vector<32x256xf32>
    %c0_6 = arith.constant 0 : index
    %c0_7 = arith.constant 0 : index
    %8 = vector.load %arg4[%c0_6, %c0_7] : memref<256x768xbf16, #tpu.memory_space<vmem>>, vector<256x768xbf16>
    %c0_8 = arith.constant 0 : index
    %c0_9 = arith.constant 0 : index
    %9 = vector.load %arg5[%c0_8, %c0_9] : memref<1x768xf32, #tpu.memory_space<vmem>>, vector<1x768xf32>
    %10 = arith.truncf %7 : vector<32x256xf32> to vector<32x256xbf16>
    %cst_10 = arith.constant dense<0.000000e+00> : vector<32x768xf32>
    %11 = tpu.matmul %10, %8, %cst_10 {dimension_numbers = #tpu.dot_dimension_numbers<[1], [0], [0], [1], [0, 0, 1, 1], [], []>} : vector<32x256xbf16>, vector<256x768xbf16>, vector<32x768xf32> -> vector<32x768xf32>
    %12 = vector.broadcast %9 : vector<1x768xf32> to vector<32x768xf32>
    %13 = arith.addf %11, %12 : vector<32x768xf32>
    %14 = vector.extract_strided_slice %13 {offsets = [0, 0], sizes = [32, 256], strides = [1, 1]} : vector<32x768xf32> to vector<32x256xf32>
    %15 = math.tanh %14 : vector<32x256xf32>
    %cst_11 = arith.constant 1.000000e+00 : f32
    %16 = vector.broadcast %cst_11 : f32 to vector<32x256xf32>
    %17 = arith.addf %16, %15 : vector<32x256xf32>
    %cst_12 = arith.constant 5.000000e-01 : f32
    %18 = vector.broadcast %cst_12 : f32 to vector<32x256xf32>
    %19 = arith.mulf %18, %17 : vector<32x256xf32>
    %20 = vector.extract_strided_slice %13 {offsets = [0, 256], sizes = [32, 256], strides = [1, 1]} : vector<32x768xf32> to vector<32x256xf32>
    %21 = math.tanh %20 : vector<32x256xf32>
    %22 = vector.extract_strided_slice %13 {offsets = [0, 512], sizes = [32, 256], strides = [1, 1]} : vector<32x768xf32> to vector<32x256xf32>
    %23 = math.tanh %22 : vector<32x256xf32>
    %cst_13 = arith.constant 1.000000e+00 : f32
    %24 = vector.broadcast %cst_13 : f32 to vector<32x256xf32>
    %25 = arith.addf %24, %23 : vector<32x256xf32>
    %cst_14 = arith.constant 5.000000e-01 : f32
    %26 = vector.broadcast %cst_14 : f32 to vector<32x256xf32>
    %27 = arith.mulf %26, %25 : vector<32x256xf32>
    %28 = arith.mulf %19, %21 : vector<32x256xf32>
    %29 = math.tanh %28 : vector<32x256xf32>
    %30 = arith.mulf %27, %29 : vector<32x256xf32>
    %c0_15 = arith.constant 0 : index
    %c0_16 = arith.constant 0 : index
    %31 = vector.load %arg6[%c0_15, %c0_16] : memref<256x768xbf16, #tpu.memory_space<vmem>>, vector<256x768xbf16>
    %c0_17 = arith.constant 0 : index
    %c0_18 = arith.constant 0 : index
    %32 = vector.load %arg7[%c0_17, %c0_18] : memref<1x768xf32, #tpu.memory_space<vmem>>, vector<1x768xf32>
    %33 = arith.truncf %30 : vector<32x256xf32> to vector<32x256xbf16>
    %cst_19 = arith.constant dense<0.000000e+00> : vector<32x768xf32>
    %34 = tpu.matmul %33, %31, %cst_19 {dimension_numbers = #tpu.dot_dimension_numbers<[1], [0], [0], [1], [0, 0, 1, 1], [], []>} : vector<32x256xbf16>, vector<256x768xbf16>, vector<32x768xf32> -> vector<32x768xf32>
    %35 = vector.broadcast %32 : vector<1x768xf32> to vector<32x768xf32>
    %36 = arith.addf %34, %35 : vector<32x768xf32>
    %37 = vector.extract_strided_slice %36 {offsets = [0, 0], sizes = [32, 256], strides = [1, 1]} : vector<32x768xf32> to vector<32x256xf32>
    %38 = math.tanh %37 : vector<32x256xf32>
    %cst_20 = arith.constant 1.000000e+00 : f32
    %39 = vector.broadcast %cst_20 : f32 to vector<32x256xf32>
    %40 = arith.addf %39, %38 : vector<32x256xf32>
    %cst_21 = arith.constant 5.000000e-01 : f32
    %41 = vector.broadcast %cst_21 : f32 to vector<32x256xf32>
    %42 = arith.mulf %41, %40 : vector<32x256xf32>
    %43 = vector.extract_strided_slice %36 {offsets = [0, 256], sizes = [32, 256], strides = [1, 1]} : vector<32x768xf32> to vector<32x256xf32>
    %44 = math.tanh %43 : vector<32x256xf32>
    %45 = vector.extract_strided_slice %36 {offsets = [0, 512], sizes = [32, 256], strides = [1, 1]} : vector<32x768xf32> to vector<32x256xf32>
    %46 = math.tanh %45 : vector<32x256xf32>
    %cst_22 = arith.constant 1.000000e+00 : f32
    %47 = vector.broadcast %cst_22 : f32 to vector<32x256xf32>
    %48 = arith.addf %47, %46 : vector<32x256xf32>
    %cst_23 = arith.constant 5.000000e-01 : f32
    %49 = vector.broadcast %cst_23 : f32 to vector<32x256xf32>
    %50 = arith.mulf %49, %48 : vector<32x256xf32>
    %51 = arith.mulf %42, %44 : vector<32x256xf32>
    %52 = math.tanh %51 : vector<32x256xf32>
    %53 = arith.mulf %50, %52 : vector<32x256xf32>
    %54 = arith.truncf %53 : vector<32x256xf32> to vector<32x256xbf16>
    %c0_24 = arith.constant 0 : index
    %c0_25 = arith.constant 0 : index
    %55 = vector.load %arg8[%c0_24, %c0_25] : memref<256x128xbf16, #tpu.memory_space<vmem>>, vector<256x128xbf16>
    %cst_26 = arith.constant dense<0.000000e+00> : vector<32x128xf32>
    %56 = tpu.matmul %54, %55, %cst_26 {dimension_numbers = #tpu.dot_dimension_numbers<[1], [0], [0], [1], [0, 0, 1, 1], [], []>} : vector<32x256xbf16>, vector<256x128xbf16>, vector<32x128xf32> -> vector<32x128xf32>
    %c0_27 = arith.constant 0 : index
    %c0_28 = arith.constant 0 : index
    %57 = vector.load %arg9[%c0_27, %c0_28] : memref<1x128xf32, #tpu.memory_space<vmem>>, vector<1x128xf32>
    %58 = vector.broadcast %57 : vector<1x128xf32> to vector<32x128xf32>
    %59 = arith.addf %56, %58 : vector<32x128xf32>
    %60 = math.tanh %59 : vector<32x128xf32>
    %c0_29 = arith.constant 0 : index
    %c0_30 = arith.constant 0 : index
    %61 = vector.load %arg10[%c0_29, %c0_30] : memref<32x128xf32, #tpu.memory_space<vmem>>, vector<32x128xf32>
    tpu.vector_store %arg10[%c0_29, %c0_30], %60 {strides = array<i32>} : memref<32x128xf32, #tpu.memory_space<vmem>>, vector<32x128xf32>,
    return
  }
  func.func @transform_0(%arg0: i32) -> (i32, i32) {
    %c0_i32 = arith.constant 0 : i32
    %c0_i32_0 = arith.constant 0 : i32
    return %arg0, %c0_i32 : i32, i32
  }
  func.func @transform_1(%arg0: i32) -> (i32, i32) {
    %c0_i32 = arith.constant 0 : i32
    %c0_i32_0 = arith.constant 0 : i32
    %c0_i32_1 = arith.constant 0 : i32
    return %c0_i32, %c0_i32_0 : i32, i32
  }
  func.func @transform_2(%arg0: i32) -> (i32, i32) {
    %c0_i32 = arith.constant 0 : i32
    %c0_i32_0 = arith.constant 0 : i32
    %c0_i32_1 = arith.constant 0 : i32
    return %c0_i32, %c0_i32_0 : i32, i32
  }
  func.func @transform_3(%arg0: i32) -> (i32, i32) {
    %c0_i32 = arith.constant 0 : i32
    %c0_i32_0 = arith.constant 0 : i32
    %c0_i32_1 = arith.constant 0 : i32
    return %c0_i32, %c0_i32_0 : i32, i32
  }
  func.func @transform_4(%arg0: i32) -> (i32, i32) {
    %c0_i32 = arith.constant 0 : i32
    %c0_i32_0 = arith.constant 0 : i32
    %c0_i32_1 = arith.constant 0 : i32
    return %c0_i32, %c0_i32_0 : i32, i32
  }
  func.func @transform_5(%arg0: i32) -> (i32, i32) {
    %c0_i32 = arith.constant 0 : i32
    %c0_i32_0 = arith.constant 0 : i32
    %c0_i32_1 = arith.constant 0 : i32
    return %c0_i32, %c0_i32_0 : i32, i32
  }
  func.func @transform_6(%arg0: i32) -> (i32, i32) {
    %c0_i32 = arith.constant 0 : i32
    %c0_i32_0 = arith.constant 0 : i32
    %c0_i32_1 = arith.constant 0 : i32
    return %c0_i32, %c0_i32_0 : i32, i32
  }
  func.func @transform_7(%arg0: i32) -> (i32, i32) {
    %c0_i32 = arith.constant 0 : i32
    %c0_i32_0 = arith.constant 0 : i32
    %c0_i32_1 = arith.constant 0 : i32
    return %c0_i32, %c0_i32_0 : i32, i32
  }
  func.func @transform_8(%arg0: i32) -> (i32, i32) {
    %c0_i32 = arith.constant 0 : i32
    %c0_i32_0 = arith.constant 0 : i32
    %c0_i32_1 = arith.constant 0 : i32
    return %c0_i32, %c0_i32_0 : i32, i32
  }
  func.func @transform_9(%arg0: i32) -> (i32, i32) {
    %c0_i32 = arith.constant 0 : i32
    %c0_i32_0 = arith.constant 0 : i32
    return %arg0, %c0_i32 : i32, i32
  }
}

</mosaic_0001>

<bundles_post_ra>
// kernel: tpu_custom_call.1
= control target key start
LH: loop header
LB: loop body
LE: loop exit
PB: predicated region body
PF: predicated region fallthrough
CT: control target
= control target key end

     0   :  { %14 = vsyncpa [#allocation3], 0  ;;  %s3298_s0 = inlined_call_operand.hbm [shape: bf16[32,128], index: 0, kind: input, shape index: {}]   ;;  %s3299_s1 = inlined_call_operand.hbm [shape: bf16[128,256], index: 1, kind: input, shape index: {}]   ;;  %s3300_s2 = inlined_call_operand.hbm [shape: f32[1,256], index: 2, kind: input, shape index: {}]   ;;  %s3301_s3 = inlined_call_operand.hbm [shape: bf16[256,768], index: 3, kind: input, shape index: {}]   ;;  %s3302_s4 = inlined_call_operand.vmem [shape: f32[1,768], index: 4, kind: input, shape index: {}]   ;;  %s3303_s5 = inlined_call_operand.hbm [shape: bf16[256,768], index: 5, kind: input, shape index: {}]   ;;  %s3304_s6 = inlined_call_operand.hbm [shape: f32[1,768], index: 6, kind: input, shape index: {}]   ;;  %s3305_s7 = inlined_call_operand.hbm [shape: bf16[256,128], index: 7, kind: input, shape index: {}]   ;;  %s3306_s8 = inlined_call_operand.vmem [shape: f32[1,128], index: 8, kind: input, shape index: {}]   ;;  %s3307_s9 = inlined_call_operand.hbm [shape: f32[32,128], index: 9, kind: output, shape index: {}]  }
   0x1   :  { %15 = vsyncpa [#allocation6], 0 }
   0x2   :  { %16 = vsyncpa [#allocation9], 0 }
   0x3   :  { %17 = vsyncpa [#allocation12], 0 }
   0x4   :  { %18 = vsyncpa [#allocation4], 0  ;;  %s3134_s30 = smov [#allocation5]  }
   0x5   :  { %s36_s10 = sshll.u32 %s3134_s30, 4  ;;  %s37_s10 = int_to_ptr.vmem [resolvable:$true] %s36_s10 }
   0x6   :  { %s2972_s11 = scalar_lea.vmem %s37_s10, 2048  ;;  %p2977_p1 = scmp.lt.s32.totalorder %s37_s10, %s37_s10 }
   0x7   :  { %p2973_p0 = scmp.ne.s32.totalorder %s37_s10, %s2972_s11  ;;  %p2978_p2 = scmp.lt.s32.totalorder %s2972_s11, %s2972_s11 }
   0x9   :  { %p2979_p3 = por %p2978_p2, %p2977_p1 }
   0xb   :  { %p2980_p4 = pnand %p2979_p3, %p2973_p0 }
   0xd   :  { %2983 = shalt.err (!%p2980_p4)
}
   0xe   :  { %s3135_s12 = smov 128   ;;  %s3136_s13 = smov 8  }
   0xf   :  { %42 = dma.hbm_to_vmem [thread:$0]  %s3299_s1, 2048, %s37_s10, [#allocation6], %s3135_s12, %s3135_s12, %s3136_s13  }
  0x10   :  { %s3137_s16 = smov [#allocation8]  }
  0x11   :  { %s58_s17 = sshll.u32 %s3137_s16, 4  ;;  %s59_s17 = int_to_ptr.vmem [resolvable:$true] %s58_s17 }
  0x12   :  { %s2992_s18 = scalar_lea.vmem %s59_s17, 12288  ;;  %p2997_p6 = scmp.lt.s32.totalorder %s59_s17, %s59_s17 }
  0x13   :  { %p2993_p5 = scmp.ne.s32.totalorder %s59_s17, %s2992_s18  ;;  %p2998_p7 = scmp.lt.s32.totalorder %s2992_s18, %s2992_s18 }
  0x15   :  { %p2999_p8 = por %p2998_p7, %p2997_p6 }
  0x17   :  { %p3000_p9 = pnand %p2999_p8, %p2993_p5 }
  0x19   :  { %3003 = shalt.err (!%p3000_p9)
}
  0x1a   :  { %s3138_s19 = smov 384   ;;  %s3139_s20 = smov 24  }
  0x1b   :  { %64 = dma.hbm_to_vmem [thread:$0]  %s3301_s3, 12288, %s59_s17, [#allocation9], %s3138_s19, %s3138_s19, %s3139_s20  }
  0x1c   :  { %s3140_s1 = smov [#allocation11]   ;;  %s3141_s24 = smov [#allocation2]  }
  0x1d   :  { %s85_s23 = sshll.u32 %s3140_s1, 4  ;;  %s24_s25 = sshll.u32 %s3141_s24, 4  ;;  %s86_s23 = int_to_ptr.vmem [resolvable:$true] %s85_s23  ;;  %s25_s25 = int_to_ptr.vmem [resolvable:$true] %s24_s25 }
  0x1e   :  { %s3012_s26 = scalar_lea.vmem %s86_s23, 96  ;;  %p3017_p11 = scmp.lt.s32.totalorder %s86_s23, %s86_s23 }
  0x1f   :  { %p3013_p10 = scmp.ne.s32.totalorder %s86_s23, %s3012_s26  ;;  %p3018_p12 = scmp.lt.s32.totalorder %s3012_s26, %s3012_s26 }
  0x21   :  { %p3019_p13 = por %p3018_p12, %p3017_p11 }
  0x23   :  { %p3020_p0 = pnand %p3019_p13, %p3013_p10 }
  0x25   :  { %3023 = shalt.err (!%p3020_p0)
}
  0x26   :  { %88 = dma.hbm_to_vmem [thread:$0]  %s3304_s6, 96, %s86_s23, [#allocation12]  }
  0x27   :  { %s3032_s29 = scalar_lea.vmem %s25_s25, 256  ;;  %p3037_p2 = scmp.lt.s32.totalorder %s25_s25, %s25_s25 }
  0x28   :  { %p3033_p1 = scmp.ne.s32.totalorder %s25_s25, %s3032_s29  ;;  %p3038_p3 = scmp.lt.s32.totalorder %s3032_s29, %s3032_s29 }
  0x2a   :  { %p3039_p4 = por %p3038_p3, %p3037_p2 }
  0x2c   :  { %p3040_p5 = pnand %p3039_p4, %p3033_p1 }
  0x2e   :  { %3043 = shalt.err (!%p3040_p5)
}
  0x2f   :  { %s3142_s3 = smov 64   ;;  %s3143_s30 = smov 4  }
  0x30   :  { %30 = dma.hbm_to_vmem [thread:$0]  %s3298_s0, 256, %s25_s25, [#allocation3], %s3142_s3, %s3142_s3, %s3143_s30  }
  0x31   :  { %s3144_s14 = smov [#allocation7]   ;;  %s3145_s16 = smov [#allocation10]  }
  0x32   :  { %s49_s15 = sshll.u32 %s3144_s14, 4  ;;  %s72_s6 = sshll.u32 %s3145_s16, 4  ;;  %s50_s15 = int_to_ptr.vmem [resolvable:$true] %s49_s15  ;;  %s73_s6 = int_to_ptr.vmem [resolvable:$true] %s72_s6 }
  0x33   :  { %s3052_s17 = scalar_lea.vmem %s50_s15, 32  ;;  %p3057_p7 = scmp.lt.s32.totalorder %s50_s15, %s50_s15 }
  0x34   :  { %p3053_p6 = scmp.ne.s32.totalorder %s50_s15, %s3052_s17  ;;  %p3058_p8 = scmp.lt.s32.totalorder %s3052_s17, %s3052_s17 }
  0x36   :  { %p3059_p9 = por %p3058_p8, %p3057_p7 }
  0x38   :  { %p3060_p10 = pnand %p3059_p9, %p3053_p6 }
  0x3a   :  { %3063 = shalt.err (!%p3060_p10)
}
  0x3b   :  { %52 = dma.hbm_to_vmem [thread:$0]  %s3300_s2, 32, %s50_s15, [#allocation6]  }
  0x3c   :  { %s3072_s22 = scalar_lea.vmem %s73_s6, 12288  ;;  %p3077_p12 = scmp.lt.s32.totalorder %s73_s6, %s73_s6 }
  0x3d   :  { %p3073_p11 = scmp.ne.s32.totalorder %s73_s6, %s3072_s22  ;;  %p3078_p13 = scmp.lt.s32.totalorder %s3072_s22, %s3072_s22 }
  0x3f   :  { %p3079_p0 = por %p3078_p13, %p3077_p12 }
  0x41   :  { %p3080_p1 = pnand %p3079_p0, %p3073_p11 }
  0x43   :  { %3083 = shalt.err (!%p3080_p1)
}
  0x44   :  { %78 = dma.hbm_to_vmem [thread:$0]  %s3303_s5, 12288, %s73_s6, [#allocation9], %s3138_s19, %s3138_s19, %s3139_s20  }
  0x45   :  { %s3146_s23 = smov [#allocation13]  }
  0x46   :  { %s94_s24 = sshll.u32 %s3146_s23, 4  ;;  %s95_s24 = int_to_ptr.vmem [resolvable:$true] %s94_s24 }
  0x47   :  { %s3092_s25 = scalar_lea.vmem %s95_s24, 2048  ;;  %p3097_p3 = scmp.lt.s32.totalorder %s95_s24, %s95_s24 }
  0x48   :  { %p3093_p2 = scmp.ne.s32.totalorder %s95_s24, %s3092_s25  ;;  %p3098_p4 = scmp.lt.s32.totalorder %s3092_s25, %s3092_s25 }
  0x4a   :  { %p3099_p5 = por %p3098_p4, %p3097_p3 }
  0x4c   :  { %p3100_p6 = pnand %p3099_p5, %p3093_p2 }
  0x4e   :  { %3103 = shalt.err (!%p3100_p6)
}
  0x4f   :  { %100 = dma.hbm_to_vmem [thread:$0]  %s3305_s7, 2048, %s95_s24, [#allocation12], %s3142_s3, %s3142_s3, %s3143_s30  }
  0x50   :  { %3124 = dma.done.wait [#allocation3], 256  }
  0x51   :  { %3125 = vsyncadd [#allocation3], 4294967040 }
  0x52   :  { %3126 = dma.done.wait [#allocation6], 2080  }
  0x53   :  { %3127 = vsyncadd [#allocation6], 4294965216 }
  0x54   :  { %3128 = dma.done.wait [#allocation9], 24576  }
  0x55   :  { %3129 = vsyncadd [#allocation9], 4294942720 }
  0x56   :  { %3130 = dma.done.wait [#allocation12], 2144  }
  0x57   :  { %3131 = vsyncadd [#allocation12], 4294965152  ;;  %v3147_v0 = vmov 0   ;;  %v2498_v1 = vld [vmem:[#allocation5 + $0x74] ss:$8 sps:$4 sm:$0xff]  }
  0x58   :  { %281 = vmatprep.mubr.bf16.mxu0 %v3147_v0  ;;  %v2500_v2 = vld [vmem:[#allocation5 + $0x70] ss:$8 sps:$4 sm:$0xff]   ;;  %249 = vmatprep.subr.bf16.mxu0 %v2498_v1  ;;  %v2501_v3 = vld [vmem:[#allocation5 + $0x64] ss:$8 sps:$4 sm:$0xff]   ;;  %v2503_v4 = vld [vmem:[#allocation5 + $0x60] ss:$8 sps:$4 sm:$0xff]  }
  0x59   :  { %250 = vmatpush1.bf16.msra.mxu0 %v2500_v2  ;;  %v2504_v5 = vld [vmem:[#allocation5 + $0x54] ss:$8 sps:$4 sm:$0xff]   ;;  %v2506_v6 = vld [vmem:[#allocation5 + $0x50] ss:$8 sps:$4 sm:$0xff]   ;;  %v2507_v7 = vld [vmem:[#allocation5 + $0x44] ss:$8 sps:$4 sm:$0xff]  }
  0x5a   :  { %251 = vmatprep.subr.bf16.mxu0 %v2501_v3  ;;  %v2509_v8 = vld [vmem:[#allocation5 + $0x40] ss:$8 sps:$4 sm:$0xff]   ;;  %v2510_v9 = vld [vmem:[#allocation5 + $0x34] ss:$8 sps:$4 sm:$0xff]   ;;  %v2512_v12 = vld [vmem:[#allocation5 + $0x30] ss:$8 sps:$4 sm:$0xff]  }
  0x5b   :  { %v2524_v10 = vld [vmem:[#allocation8 + $0x154] ss:$24 sps:$4 sm:$0xff]   ;;  %v2526_v11 = vld [vmem:[#allocation8 + $0x150] ss:$24 sps:$4 sm:$0xff]   ;;  %v2530_v14 = vld [vmem:[#allocation8 + $0x124] ss:$24 sps:$4 sm:$0xff]  }
  0x5c   :  { %v2513_v13 = vld [vmem:[#allocation5 + $0x24] ss:$8 sps:$4 sm:$0xff]   ;;  %922 = vmatprep.subr.bf16.mxu1 %v2524_v10  ;;  %v2515_v17 = vld [vmem:[#allocation5 + $0x20] ss:$8 sps:$4 sm:$0xff]   ;;  %v2516_v18 = vld [vmem:[#allocation5 + $0x14] ss:$8 sps:$4 sm:$0xff]  }
  0x5d   :  { %252 = vmatpush1.bf16.msra.mxu0 %v2503_v4  ;;  %923 = vmatpush1.bf16.msra.mxu1 %v2526_v11  ;;  %v2532_v15 = vld [vmem:[#allocation8 + $0x120] ss:$24 sps:$4 sm:$0xff]   ;;  %v2536_v16 = vld [vmem:[#allocation8 + $0xf4] ss:$24 sps:$4 sm:$0xff]   ;;  %v2538_v19 = vld [vmem:[#allocation8 + $0xf0] ss:$24 sps:$4 sm:$0xff]  }
  0x5e   :  { %253 = vmatprep.subr.bf16.mxu0 %v2504_v5  ;;  %924 = vmatprep.subr.bf16.mxu1 %v2530_v14  ;;  %v2542_v20 = vld [vmem:[#allocation8 + $0xc4] ss:$24 sps:$4 sm:$0xff]   ;;  %v2518_v21 = vld [vmem:[#allocation5 + $0x10] ss:$8 sps:$4 sm:$0xff]   ;;  %v2533_v34 = vld [vmem:[#allocation8 + $0x128] ss:$24 sps:$4 sm:$0xff]  }
  0x5f   :  { %v2519_v22 = vld [vmem:[#allocation5 + $0x4] ss:$8 sps:$4 sm:$0xff]   ;;  %v2521_v25 = vld [vmem:[#allocation5] ss:$8 sps:$4 sm:$0xff]   ;;  %v2522_v29 = vld [vmem:[#allocation2] sm:$0xff]  }
  0x60   :  { %v2544_v23 = vld [vmem:[#allocation8 + $0xc0] ss:$24 sps:$4 sm:$0xff]   ;;  %v2548_v24 = vld [vmem:[#allocation8 + $0x94] ss:$24 sps:$4 sm:$0xff]   ;;  %v2550_v27 = vld [vmem:[#allocation8 + $0x90] ss:$24 sps:$4 sm:$0xff]  }
  0x61   :  { %254 = vmatpush1.bf16.msra.mxu0 %v2506_v6  ;;  %925 = vmatpush1.bf16.msra.mxu1 %v2532_v15  ;;  %v2529_v26 = vld [vmem:[#allocation8 + $0x15c] ss:$24 sps:$4 sm:$0xff]   ;;  %v2527_v30 = vld [vmem:[#allocation8 + $0x158] ss:$24 sps:$4 sm:$0xff]   ;;  %v2535_v31 = vld [vmem:[#allocation8 + $0x12c] ss:$24 sps:$4 sm:$0xff]  }
  0x62   :  { %255 = vmatprep.subr.bf16.mxu0 %v2507_v7  ;;  %926 = vmatprep.subr.bf16.mxu1 %v2536_v16  ;;  %v2554_v28 = vld [vmem:[#allocation8 + $0x64] ss:$24 sps:$4 sm:$0xff]   ;;  %v2556_v32 = vld [vmem:[#allocation8 + $0x60] ss:$24 sps:$4 sm:$0xff]   ;;  %v2560_v33 = vld [vmem:[#allocation8 + $0x34] ss:$24 sps:$4 sm:$0xff]  }
  0x63   :  { %v2541_v35 = vld [vmem:[#allocation8 + $0xfc] ss:$24 sps:$4 sm:$0xff]   ;;  %v2562_v36 = vld [vmem:[#allocation8 + $0x30] ss:$24 sps:$4 sm:$0xff]   ;;  %v2547_v40 = vld [vmem:[#allocation8 + $0xcc] ss:$24 sps:$4 sm:$0xff]  }
  0x64   :  { %v2566_v37 = vld [vmem:[#allocation8 + $0x4] ss:$24 sps:$4 sm:$0xff]   ;;  %v2539_v39 = vld [vmem:[#allocation8 + $0xf8] ss:$24 sps:$4 sm:$0xff]   ;;  %v2572_v42 = vld [vmem:[#allocation8 + $0x2d4] ss:$24 sps:$4 sm:$0xff]  }
  0x65   :  { %256 = vmatpush1.bf16.msra.mxu0 %v2509_v8  ;;  %927 = vmatpush1.bf16.msra.mxu1 %v2538_v19  ;;  %v2523_v38 = vld [vmem:[#allocation2 + $0x8] sm:$0xff]   ;;  %v2545_v43 = vld [vmem:[#allocation8 + $0xc8] ss:$24 sps:$4 sm:$0xff]   ;;  %v2559_v48 = vld [vmem:[#allocation8 + $0x6c] ss:$24 sps:$4 sm:$0xff]  }
  0x66   :  { %257 = vmatprep.subr.bf16.mxu0 %v2510_v9  ;;  %928 = vmatprep.subr.bf16.mxu1 %v2542_v20  ;;  %v2568_v41 = vld [vmem:[#allocation8] ss:$24 sps:$4 sm:$0xff]   ;;  %v2553_v44 = vld [vmem:[#allocation8 + $0x9c] ss:$24 sps:$4 sm:$0xff]   ;;  %v2574_v45 = vld [vmem:[#allocation8 + $0x2d0] ss:$24 sps:$4 sm:$0xff]   ;;  %v147_v20 = vlaneseq }
  0x67   :  { %v2551_v46 = vld [vmem:[#allocation8 + $0x98] ss:$24 sps:$4 sm:$0xff]   ;;  %v2578_v47 = vld [vmem:[#allocation8 + $0x2a4] ss:$24 sps:$4 sm:$0xff]   ;;  %v2584_v50 = vld [vmem:[#allocation8 + $0x274] ss:$24 sps:$4 sm:$0xff]  }
  0x68   :  { %v2580_v49 = vld [vmem:[#allocation8 + $0x2a0] ss:$24 sps:$4 sm:$0xff]   ;;  %v2565_v52 = vld [vmem:[#allocation8 + $0x3c] ss:$24 sps:$4 sm:$0xff]   ;;  %v2586_v53 = vld [vmem:[#allocation8 + $0x270] ss:$24 sps:$4 sm:$0xff]  }
  0x69   :  { %258 = vmatpush1.bf16.msra.mxu0 %v2512_v12  ;;  %929 = vmatpush1.bf16.msra.mxu1 %v2544_v23  ;;  %v2557_v51 = vld [vmem:[#allocation8 + $0x68] ss:$24 sps:$4 sm:$0xff]   ;;  %v2590_v54 = vld [vmem:[#allocation8 + $0x244] ss:$24 sps:$4 sm:$0xff]   ;;  %v2563_v55 = vld [vmem:[#allocation8 + $0x38] ss:$24 sps:$4 sm:$0xff]  }
  0x6a   :  { %259 = vmatprep.subr.bf16.mxu0 %v2513_v13  ;;  %930 = vmatprep.subr.bf16.mxu1 %v2548_v24  ;;  %v2571_v56 = vld [vmem:[#allocation8 + $0xc] ss:$24 sps:$4 sm:$0xff]   ;;  %v2592_v57 = vld [vmem:[#allocation8 + $0x240] ss:$24 sps:$4 sm:$0xff]   ;;  %v2577_v60 = vld [vmem:[#allocation8 + $0x2dc] ss:$24 sps:$4 sm:$0xff]  }
  0x6b   :  { %v2596_v58 = vld [vmem:[#allocation8 + $0x214] ss:$24 sps:$4 sm:$0xff]   ;;  %v2569_v59 = vld [vmem:[#allocation8 + $0x8] ss:$24 sps:$4 sm:$0xff]   ;;  %v2575_v62 = vld [vmem:[#allocation8 + $0x2d8] ss:$24 sps:$4 sm:$0xff]  }
  0x6c   :  { %v2598_v61 = vld [vmem:[#allocation8 + $0x210] ss:$24 sps:$4 sm:$0xff]   ;;  %v2583_v63 = vld [vmem:[#allocation8 + $0x2ac] ss:$24 sps:$4 sm:$0xff]   ;;  %v2589_v1 = vld [vmem:[#allocation8 + $0x27c] ss:$24 sps:$4 sm:$0xff]  }
  0x6d   :  { %260 = vmatpush1.bf16.msra.mxu0 %v2515_v17  ;;  %931 = vmatpush1.bf16.msra.mxu1 %v2550_v27  ;;  %v2587_v2 = vld [vmem:[#allocation8 + $0x278] ss:$24 sps:$4 sm:$0xff]   ;;  %v2595_v3 = vld [vmem:[#allocation8 + $0x24c] ss:$24 sps:$4 sm:$0xff]   ;;  %v2593_v4 = vld [vmem:[#allocation8 + $0x248] ss:$24 sps:$4 sm:$0xff]  }
  0x6e   :  { %261 = vmatprep.subr.bf16.mxu0 %v2516_v18  ;;  %932 = vmatprep.subr.bf16.mxu1 %v2554_v28  ;;  %v2601_v5 = vld [vmem:[#allocation8 + $0x21c] ss:$24 sps:$4 sm:$0xff]   ;;  %v2599_v6 = vld [vmem:[#allocation8 + $0x218] ss:$24 sps:$4 sm:$0xff]   ;;  %v2607_v9 = vld [vmem:[#allocation8 + $0x1ec] ss:$24 sps:$4 sm:$0xff]  }
  0x6f   :  { %v2602_v7 = vld [vmem:[#allocation8 + $0x1e4] ss:$24 sps:$4 sm:$0xff]   ;;  %v2604_v8 = vld [vmem:[#allocation8 + $0x1e0] ss:$24 sps:$4 sm:$0xff]   ;;  %v2608_v11 = vld [vmem:[#allocation8 + $0x1b4] ss:$24 sps:$4 sm:$0xff]  }
  0x70   :  { %v2605_v10 = vld [vmem:[#allocation8 + $0x1e8] ss:$24 sps:$4 sm:$0xff]   ;;  %v2613_v13 = vld [vmem:[#allocation8 + $0x1bc] ss:$24 sps:$4 sm:$0xff]   ;;  %v2611_v14 = vld [vmem:[#allocation8 + $0x1b8] ss:$24 sps:$4 sm:$0xff]  }
  0x71   :  { %262 = vmatpush1.bf16.msra.mxu0 %v2518_v21  ;;  %933 = vmatpush1.bf16.msra.mxu1 %v2556_v32  ;;  %v2610_v12 = vld [vmem:[#allocation8 + $0x1b0] ss:$24 sps:$4 sm:$0xff]   ;;  %v2614_v15 = vld [vmem:[#allocation8 + $0x184] ss:$24 sps:$4 sm:$0xff]   ;;  %v2616_v16 = vld [vmem:[#allocation8 + $0x180] ss:$24 sps:$4 sm:$0xff]  }
  0x72   :  { %263 = vmatprep.subr.bf16.mxu0 %v2519_v22  ;;  %934 = vmatprep.subr.bf16.mxu1 %v2560_v33  ;;  %v2619_v17 = vld [vmem:[#allocation8 + $0x18c] ss:$24 sps:$4 sm:$0xff]   ;;  %v2617_v18 = vld [vmem:[#allocation8 + $0x188] ss:$24 sps:$4 sm:$0xff]   ;;  %v3237_v21 = vshrl.u32 %v147_v20, 7 }
  0x73   :  { %v2622_v19 = vld [vmem:[#allocation8 + $0x164] ss:$24 sps:$4 sm:$0xff]   ;;  %v2667_v20 = vld [vmem:[#allocation8 + $0x194] ss:$24 sps:$4 sm:$0xff]  }
  0x74   :  { %v3240_v22 = vsub.s32 1, %v3237_v21  ;;  %v3243_v23 = vsub.s32 0, %v3237_v21  ;;  %v145_v24 = vld [vmem:[#allocation7] sm:$0x3] }
  0x75   :  { %264 = vmatpush1.bf16.msra.mxu0 %v2521_v25  ;;  %935 = vmatpush1.bf16.msra.mxu1 %v2562_v36 }
  0x76   :  { %975 = vmatprep.subr.bf16.mxu0 %v2529_v26  ;;  %936 = vmatprep.subr.bf16.mxu1 %v2566_v37  ;;  %v154_v26 = vrot.slane %v145_v24, %v3240_v22  ;;  %v150_v27 = vrot.slane %v145_v24, %v3243_v23  ;;  %v2665_v24 = vld [vmem:[#allocation8 + $0x190] ss:$24 sps:$4 sm:$0xff]  }
  0x78   :  { %282 = vmatmul.mubr.bf16.vlgmr.msra.gmra.mxu0 %v2522_v29 }
  0x79   :  { %291 = vmatprep.mubr.bf16.mxu0 %v3147_v0  ;;  %976 = vmatpush1.bf16.msra.mxu0 %v2527_v30  ;;  %v2581_v0 = vld [vmem:[#allocation8 + $0x2a8] ss:$24 sps:$4 sm:$0xff]  }
  0x7a   :  { %977 = vmatprep.subr.bf16.mxu0 %v2535_v31  ;;  %937 = vmatpush1.bf16.msra.mxu1 %v2568_v41 }
  0x7b   :  { %938 = vmatprep.subr.bf16.mxu1 %v2572_v42 }
  0x7d   :  { %978 = vmatpush1.bf16.msra.mxu0 %v2533_v34 }
  0x7e   :  { %979 = vmatprep.subr.bf16.mxu0 %v2541_v35  ;;  %939 = vmatpush2.bf16.msra.mxu1 %v2574_v45 }
  0x7f   :  { %940 = vmatprep.subr.bf16.mxu1 %v2578_v47  ;;  %v2625_v47 = vld [vmem:[#allocation8 + $0x134] ss:$24 sps:$4 sm:$0xff]  }
  0x80   :  { %292 = vmatmul.mubr.bf16.gmra.mxu0 %v2523_v38 }
  0x81   :  { %980 = vmatpush1.bf16.msra.mxu0 %v2539_v39 }
  0x82   :  { %981 = vmatprep.subr.bf16.mxu0 %v2547_v40  ;;  %941 = vmatpush2.bf16.msra.mxu1 %v2580_v49 }
  0x83   :  { %942 = vmatprep.subr.bf16.mxu1 %v2584_v50 }
  0x85   :  { %982 = vmatpush1.bf16.msra.mxu0 %v2545_v43 }
  0x86   :  { %983 = vmatprep.subr.bf16.mxu0 %v2553_v44  ;;  %943 = vmatpush2.bf16.msra.mxu1 %v2586_v53  ;;  %v2620_v44 = vld [vmem:[#allocation8 + $0x160] ss:$24 sps:$4 sm:$0xff]  }
  0x87   :  { %944 = vmatprep.subr.bf16.mxu1 %v2590_v54  ;;  %v2623_v54 = vld [vmem:[#allocation8 + $0x130] ss:$24 sps:$4 sm:$0xff]  }
  0x89   :  { %984 = vmatpush1.bf16.msra.mxu0 %v2551_v46 }
  0x8a   :  { %985 = vmatprep.subr.bf16.mxu0 %v2559_v48  ;;  %945 = vmatpush2.bf16.msra.mxu1 %v2592_v57 }
  0x8b   :  { %946 = vmatprep.subr.bf16.mxu1 %v2596_v58 }
  0x8d   :  { %986 = vmatpush1.bf16.msra.mxu0 %v2557_v51 }
  0x8e   :  { %987 = vmatprep.subr.bf16.mxu0 %v2565_v52  ;;  %947 = vmatpush2.bf16.msra.mxu1 %v2598_v61  ;;  %v2629_v61 = vld [vmem:[#allocation8 + $0xd0] ss:$24 sps:$4 sm:$0xff]  }
  0x8f   :  { %948 = vmatprep.subr.bf16.mxu1 %v2602_v7  ;;  %v2644_v7 = vld [vmem:[#allocation8 + $0x2e0] ss:$24 sps:$4 sm:$0xff]  }
  0x91   :  { %988 = vmatpush1.bf16.msra.mxu0 %v2563_v55  ;;  %v2628_v55 = vld [vmem:[#allocation8 + $0x104] ss:$24 sps:$4 sm:$0xff]  }
  0x92   :  { %989 = vmatprep.subr.bf16.mxu0 %v2571_v56  ;;  %949 = vmatpush2.bf16.msra.mxu1 %v2604_v8  ;;  %v2649_v8 = vld [vmem:[#allocation8 + $0x2b4] ss:$24 sps:$4 sm:$0xff]  }
  0x93   :  { %950 = vmatprep.subr.bf16.mxu1 %v2608_v11  ;;  %v2650_v11 = vld [vmem:[#allocation8 + $0x280] ss:$24 sps:$4 sm:$0xff]  }
  0x95   :  { %990 = vmatpush1.bf16.msra.mxu0 %v2569_v59  ;;  %v2626_v59 = vld [vmem:[#allocation8 + $0x100] ss:$24 sps:$4 sm:$0xff]  }
  0x96   :  { %991 = vmatprep.subr.bf16.mxu0 %v2577_v60  ;;  %951 = vmatpush2.bf16.msra.mxu1 %v2610_v12  ;;  %v2631_v60 = vld [vmem:[#allocation8 + $0xd4] ss:$24 sps:$4 sm:$0xff]  }
  0x97   :  { %952 = vmatprep.subr.bf16.mxu1 %v2614_v15  ;;  %v2655_v12 = vld [vmem:[#allocation8 + $0x254] ss:$24 sps:$4 sm:$0xff]   ;;  %v2656_v15 = vld [vmem:[#allocation8 + $0x220] ss:$24 sps:$4 sm:$0xff]  }
  0x99   :  { %992 = vmatpush2.bf16.msra.mxu0 %v2575_v62  ;;  %v2634_v62 = vld [vmem:[#allocation8 + $0xa4] ss:$24 sps:$4 sm:$0xff]  }
  0x9a   :  { %993 = vmatprep.subr.bf16.mxu0 %v2583_v63  ;;  %953 = vmatpush2.bf16.msra.mxu1 %v2616_v16  ;;  %v2632_v63 = vld [vmem:[#allocation8 + $0xa0] ss:$24 sps:$4 sm:$0xff]   ;;  %v2661_v16 = vld [vmem:[#allocation8 + $0x1f4] ss:$24 sps:$4 sm:$0xff]  }
  0x9b   :  { %1028 = vmatprep.subr.bf16.mxu1 %v2622_v19  ;;  %v2662_v19 = vld [vmem:[#allocation8 + $0x1c0] ss:$24 sps:$4 sm:$0xff]  }
  0x9d   :  { %994 = vmatpush2.bf16.msra.mxu0 %v2581_v0  ;;  %v2637_v0 = vld [vmem:[#allocation8 + $0x74] ss:$24 sps:$4 sm:$0xff]  }
  0x9e   :  { %995 = vmatprep.subr.bf16.mxu0 %v2589_v1  ;;  %v2635_v1 = vld [vmem:[#allocation8 + $0x70] ss:$24 sps:$4 sm:$0xff]  }
  0xa1   :  { %996 = vmatpush2.bf16.msra.mxu0 %v2587_v2  ;;  %v2640_v2 = vld [vmem:[#allocation8 + $0x44] ss:$24 sps:$4 sm:$0xff]  }
  0xa2   :  { %997 = vmatprep.subr.bf16.mxu0 %v2595_v3  ;;  %v2638_v3 = vld [vmem:[#allocation8 + $0x40] ss:$24 sps:$4 sm:$0xff]  }
  0xa5   :  { %998 = vmatpush2.bf16.msra.mxu0 %v2593_v4  ;;  %v2643_v4 = vld [vmem:[#allocation8 + $0x14] ss:$24 sps:$4 sm:$0xff]  }
  0xa6   :  { %999 = vmatprep.subr.bf16.mxu0 %v2601_v5  ;;  %v2641_v5 = vld [vmem:[#allocation8 + $0x10] ss:$24 sps:$4 sm:$0xff]  }
  0xa9   :  { %1000 = vmatpush2.bf16.msra.mxu0 %v2599_v6  ;;  %v2646_v6 = vld [vmem:[#allocation8 + $0x2e4] ss:$24 sps:$4 sm:$0xff]  }
  0xaa   :  { %1001 = vmatprep.subr.bf16.mxu0 %v2607_v9  ;;  %v2647_v9 = vld [vmem:[#allocation8 + $0x2b0] ss:$24 sps:$4 sm:$0xff]  }
  0xad   :  { %1002 = vmatpush2.bf16.msra.mxu0 %v2605_v10  ;;  %v2652_v10 = vld [vmem:[#allocation8 + $0x284] ss:$24 sps:$4 sm:$0xff]  }
  0xae   :  { %1003 = vmatprep.subr.bf16.mxu0 %v2613_v13  ;;  %v2653_v13 = vld [vmem:[#allocation8 + $0x250] ss:$24 sps:$4 sm:$0xff]  }
  0xb1   :  { %1004 = vmatpush2.bf16.msra.mxu0 %v2611_v14  ;;  %v2658_v14 = vld [vmem:[#allocation8 + $0x224] ss:$24 sps:$4 sm:$0xff]  }
  0xb2   :  { %1005 = vmatprep.subr.bf16.mxu0 %v2619_v17  ;;  %v2659_v17 = vld [vmem:[#allocation8 + $0x1f0] ss:$24 sps:$4 sm:$0xff]  }
  0xb5   :  { %1006 = vmatpush2.bf16.msra.mxu0 %v2617_v18  ;;  %v2664_v18 = vld [vmem:[#allocation8 + $0x1c4] ss:$24 sps:$4 sm:$0xff]  }
 0x138   :  { %v283_v25 = vpop.f32.mrf.mxu0 }
 0x139   :  { %v284_v32 = vadd.f32 %v283_v25, %v150_v27  ;;  %v2668_v25 = vld [vmem:[#allocation10 + $0x150] ss:$24 sps:$4 sm:$0xff]  }
 0x13a   :  { %v285_v28 = vpop.f32.mrf.mxu0 }
 0x13b   :  { %v286_v30 = vadd.f32 %v285_v28, %v154_v26  ;;  %v302_v39 = vmax.f32 %v284_v32, 0.0  ;;  %v2673_v28 = vld [vmem:[#allocation10 + $0x15c] ss:$24 sps:$4 sm:$0xff]   ;;  %v2677_v32 = vld [vmem:[#allocation10 + $0x128] ss:$24 sps:$4 sm:$0xff]  }
 0x13c   :  { %v287_v29 = vpop.f32.mrf.mxu0 }
 0x13d   :  { %v288_v31 = vadd.f32 %v287_v29, %v150_v27  ;;  %v303_v37 = vmax.f32 %v286_v30, 0.0  ;;  %v2676_v29 = vld [vmem:[#allocation10 + $0x124] ss:$24 sps:$4 sm:$0xff]  }
 0x13e   :  { %v289_v33 = vpop.f32.mrf.mxu0  ;;  %v2679_v30 = vld [vmem:[#allocation10 + $0x12c] ss:$24 sps:$4 sm:$0xff]  }
 0x13f   :  { %v290_v34 = vadd.f32 %v289_v33, %v154_v26  ;;  %v304_v35 = vmax.f32 %v288_v31, 0.0  ;;  %v2674_v31 = vld [vmem:[#allocation10 + $0x120] ss:$24 sps:$4 sm:$0xff]   ;;  %v2682_v33 = vld [vmem:[#allocation10 + $0xf4] ss:$24 sps:$4 sm:$0xff]  }
 0x140   :  { %v293_v36 = vpop.f32.mrf.mxu0 }
 0x141   :  { %v305_v38 = vmax.f32 %v290_v34, 0.0  ;;  %v294_v40 = vadd.f32 %v293_v36, %v150_v27  ;;  %v3247_v45 = vpack.c.bf16 %v304_v35, %v302_v39  ;;  %v2685_v34 = vld [vmem:[#allocation10 + $0xfc] ss:$24 sps:$4 sm:$0xff]   ;;  %v2680_v35 = vld [vmem:[#allocation10 + $0xf0] ss:$24 sps:$4 sm:$0xff]  }
 0x142   :  { %v295_v41 = vpop.f32.mrf.mxu0  ;;  %v2683_v36 = vld [vmem:[#allocation10 + $0xf8] ss:$24 sps:$4 sm:$0xff]  }
 0x143   :  { %v408_v42 = vpack.c.bf16 %v305_v38, %v303_v37  ;;  %v296_v43 = vadd.f32 %v295_v41, %v154_v26  ;;  %v306_v49 = vmax.f32 %v294_v40, 0.0  ;;  %v2688_v37 = vld [vmem:[#allocation10 + $0xc4] ss:$24 sps:$4 sm:$0xff]   ;;  %v2686_v39 = vld [vmem:[#allocation10 + $0xc0] ss:$24 sps:$4 sm:$0xff]  }
 0x144   :  { %v297_v46 = vpop.f32.mrf.mxu0  ;;  %v2691_v38 = vld [vmem:[#allocation10 + $0xcc] ss:$24 sps:$4 sm:$0xff]   ;;  %v2689_v40 = vld [vmem:[#allocation10 + $0xc8] ss:$24 sps:$4 sm:$0xff]  }
 0x145   :  { %v298_v48 = vadd.f32 %v297_v46, %v150_v27  ;;  %954 = vmatprep.mubr.bf16.mxu1 %v408_v42  ;;  %1007 = vmatprep.mubr.bf16.mxu0 %v408_v42  ;;  %v307_v51 = vmax.f32 %v296_v43, 0.0  ;;  %v2671_v27 = vld [vmem:[#allocation10 + $0x158] ss:$24 sps:$4 sm:$0xff]   ;;  %v2694_v41 = vld [vmem:[#allocation10 + $0x94] ss:$24 sps:$4 sm:$0xff]  }
 0x146   :  { %v299_v50 = vpop.f32.mrf.mxu0  ;;  %955 = vmatmul.mubr.bf16.vlgmr.msra.gmra.mxu1 %v3247_v45  ;;  %1008 = vmatmul.mubr.bf16.vlgmr.msra.gmra.mxu0 %v3247_v45  ;;  %v2692_v43 = vld [vmem:[#allocation10 + $0x90] ss:$24 sps:$4 sm:$0xff]   ;;  %v2703_v46 = vld [vmem:[#allocation10 + $0x6c] ss:$24 sps:$4 sm:$0xff]  }
 0x147   :  { %v308_v52 = vmax.f32 %v298_v48, 0.0  ;;  %v300_v53 = vadd.f32 %v299_v50, %v154_v26  ;;  %1029 = vmatpush1.bf16.msra.mxu1 %v2620_v44  ;;  %v2670_v26 = vld [vmem:[#allocation10 + $0x154] ss:$24 sps:$4 sm:$0xff]   ;;  %v2695_v44 = vld [vmem:[#allocation10 + $0x98] ss:$24 sps:$4 sm:$0xff]  }
 0x148   :  { %1030 = vmatprep.subr.bf16.mxu1 %v2625_v47  ;;  %1773 = vmatprep.subr.bf16.mxu0 %v2670_v26  ;;  %v2698_v47 = vld [vmem:[#allocation10 + $0x60] ss:$24 sps:$4 sm:$0xff]   ;;  %v2709_v50 = vld [vmem:[#allocation10 + $0x3c] ss:$24 sps:$4 sm:$0xff]   ;;  %v2763_v26 = vld [vmem:[#allocation10 + $0x18c] ss:$24 sps:$4 sm:$0xff]  }
 0x149   :  { %v309_v56 = vmax.f32 %v300_v53, 0.0  ;;  %v3251_v57 = vpack.c.bf16 %v308_v52, %v306_v49  ;;  %1774 = vmatpush1.bf16.msra.mxu0 %v2668_v25  ;;  %v2701_v48 = vld [vmem:[#allocation10 + $0x68] ss:$24 sps:$4 sm:$0xff]   ;;  %v2706_v49 = vld [vmem:[#allocation10 + $0x34] ss:$24 sps:$4 sm:$0xff]  }
 0x14a   :  { %1775 = vmatprep.subr.bf16.mxu0 %v2676_v29  ;;  %v2707_v52 = vld [vmem:[#allocation10 + $0x38] ss:$24 sps:$4 sm:$0xff]   ;;  %v2712_v53 = vld [vmem:[#allocation10 + $0x4] ss:$24 sps:$4 sm:$0xff]  }
 0x14b   :  { %v410_v58 = vpack.c.bf16 %v309_v56, %v307_v51  ;;  %1031 = vmatpush1.bf16.msra.mxu1 %v2623_v54  ;;  %v2704_v51 = vld [vmem:[#allocation10 + $0x30] ss:$24 sps:$4 sm:$0xff]   ;;  %v2715_v54 = vld [vmem:[#allocation10 + $0xc] ss:$24 sps:$4 sm:$0xff]   ;;  %v2758_v25 = vld [vmem:[#allocation10 + $0x180] ss:$24 sps:$4 sm:$0xff]  }
 0x14c   :  { %1032 = vmatprep.subr.bf16.mxu1 %v2628_v55  ;;  %v2710_v55 = vld [vmem:[#allocation10] ss:$24 sps:$4 sm:$0xff]  }
 0x14d   :  { %964 = vmatprep.mubr.bf16.mxu1 %v410_v58  ;;  %1017 = vmatprep.mubr.bf16.mxu0 %v410_v58  ;;  %v2713_v56 = vld [vmem:[#allocation10 + $0x8] ss:$24 sps:$4 sm:$0xff]  }
 0x14e   :  { %965 = vmatmul.mubr.bf16.gmra.mxu1 %v3251_v57  ;;  %1018 = vmatmul.mubr.bf16.gmra.mxu0 %v3251_v57 }
 0x14f   :  { %1033 = vmatpush1.bf16.msra.mxu1 %v2626_v59  ;;  %1060 = vmatprep.mubr.bf16.mxu1 %v408_v42  ;;  %v2697_v42 = vld [vmem:[#allocation10 + $0x9c] ss:$24 sps:$4 sm:$0xff]  }
 0x150   :  { %1034 = vmatprep.subr.bf16.mxu1 %v2631_v60  ;;  %1776 = vmatpush1.bf16.msra.mxu0 %v2674_v31  ;;  %v2721_v59 = vld [vmem:[#allocation10 + $0x2dc] ss:$24 sps:$4 sm:$0xff]   ;;  %v2719_v60 = vld [vmem:[#allocation10 + $0x2d8] ss:$24 sps:$4 sm:$0xff]  }
 0x151   :  { %1777 = vmatprep.subr.bf16.mxu0 %v2682_v33  ;;  %v406_v33 = vld [vmem:[%s3302_s4] sm:$0x3f] }
 0x153   :  { %1035 = vmatpush1.bf16.msra.mxu1 %v2629_v61  ;;  %v2724_v61 = vld [vmem:[#allocation10 + $0x2a4] ss:$24 sps:$4 sm:$0xff]  }
 0x154   :  { %1036 = vmatprep.subr.bf16.mxu1 %v2634_v62  ;;  %1778 = vmatpush1.bf16.msra.mxu0 %v2680_v35  ;;  %v2722_v62 = vld [vmem:[#allocation10 + $0x2a0] ss:$24 sps:$4 sm:$0xff]  }
 0x155   :  { %1779 = vmatprep.subr.bf16.mxu0 %v2688_v37 }
 0x157   :  { %1037 = vmatpush1.bf16.msra.mxu1 %v2632_v63  ;;  %v2727_v63 = vld [vmem:[#allocation10 + $0x2ac] ss:$24 sps:$4 sm:$0xff]  }
 0x158   :  { %1038 = vmatprep.subr.bf16.mxu1 %v2637_v0  ;;  %1780 = vmatpush1.bf16.msra.mxu0 %v2686_v39  ;;  %v2725_v0 = vld [vmem:[#allocation10 + $0x2a8] ss:$24 sps:$4 sm:$0xff]  }
 0x159   :  { %1781 = vmatprep.subr.bf16.mxu0 %v2694_v41 }
 0x15b   :  { %1039 = vmatpush1.bf16.msra.mxu1 %v2635_v1  ;;  %v2730_v1 = vld [vmem:[#allocation10 + $0x274] ss:$24 sps:$4 sm:$0xff]  }
 0x15c   :  { %1040 = vmatprep.subr.bf16.mxu1 %v2640_v2  ;;  %1782 = vmatpush1.bf16.msra.mxu0 %v2692_v43  ;;  %v2728_v2 = vld [vmem:[#allocation10 + $0x270] ss:$24 sps:$4 sm:$0xff]  }
 0x15f   :  { %1041 = vmatpush1.bf16.msra.mxu1 %v2638_v3  ;;  %v2733_v3 = vld [vmem:[#allocation10 + $0x27c] ss:$24 sps:$4 sm:$0xff]  }
 0x160   :  { %1042 = vmatprep.subr.bf16.mxu1 %v2643_v4  ;;  %v2731_v4 = vld [vmem:[#allocation10 + $0x278] ss:$24 sps:$4 sm:$0xff]  }
 0x163   :  { %1043 = vmatpush1.bf16.msra.mxu1 %v2641_v5  ;;  %v2736_v5 = vld [vmem:[#allocation10 + $0x244] ss:$24 sps:$4 sm:$0xff]  }
 0x164   :  { %1044 = vmatprep.subr.bf16.mxu1 %v2646_v6  ;;  %v2734_v6 = vld [vmem:[#allocation10 + $0x240] ss:$24 sps:$4 sm:$0xff]  }
 0x167   :  { %1045 = vmatpush2.bf16.msra.mxu1 %v2644_v7  ;;  %v2739_v7 = vld [vmem:[#allocation10 + $0x24c] ss:$24 sps:$4 sm:$0xff]  }
 0x168   :  { %1046 = vmatprep.subr.bf16.mxu1 %v2649_v8  ;;  %v2737_v8 = vld [vmem:[#allocation10 + $0x248] ss:$24 sps:$4 sm:$0xff]  }
 0x16b   :  { %1047 = vmatpush2.bf16.msra.mxu1 %v2647_v9  ;;  %v2742_v9 = vld [vmem:[#allocation10 + $0x214] ss:$24 sps:$4 sm:$0xff]  }
 0x16c   :  { %1048 = vmatprep.subr.bf16.mxu1 %v2652_v10  ;;  %v2740_v10 = vld [vmem:[#allocation10 + $0x210] ss:$24 sps:$4 sm:$0xff]  }
 0x16f   :  { %1049 = vmatpush2.bf16.msra.mxu1 %v2650_v11  ;;  %v2745_v11 = vld [vmem:[#allocation10 + $0x21c] ss:$24 sps:$4 sm:$0xff]  }
 0x170   :  { %1050 = vmatprep.subr.bf16.mxu1 %v2655_v12  ;;  %v2743_v12 = vld [vmem:[#allocation10 + $0x218] ss:$24 sps:$4 sm:$0xff]  }
 0x173   :  { %1051 = vmatpush2.bf16.msra.mxu1 %v2653_v13  ;;  %v2748_v13 = vld [vmem:[#allocation10 + $0x1e4] ss:$24 sps:$4 sm:$0xff]  }
 0x174   :  { %1052 = vmatprep.subr.bf16.mxu1 %v2658_v14  ;;  %v2746_v14 = vld [vmem:[#allocation10 + $0x1e0] ss:$24 sps:$4 sm:$0xff]  }
 0x177   :  { %1053 = vmatpush2.bf16.msra.mxu1 %v2656_v15  ;;  %v2751_v15 = vld [vmem:[#allocation10 + $0x1ec] ss:$24 sps:$4 sm:$0xff]  }
 0x178   :  { %1054 = vmatprep.subr.bf16.mxu1 %v2661_v16  ;;  %v2749_v16 = vld [vmem:[#allocation10 + $0x1e8] ss:$24 sps:$4 sm:$0xff]  }
 0x17b   :  { %1055 = vmatpush2.bf16.msra.mxu1 %v2659_v17  ;;  %v2754_v17 = vld [vmem:[#allocation10 + $0x1b4] ss:$24 sps:$4 sm:$0xff]  }
 0x17c   :  { %1056 = vmatprep.subr.bf16.mxu1 %v2664_v18  ;;  %v2752_v18 = vld [vmem:[#allocation10 + $0x1b0] ss:$24 sps:$4 sm:$0xff]  }
 0x17f   :  { %1057 = vmatpush2.bf16.msra.mxu1 %v2662_v19  ;;  %v2757_v19 = vld [vmem:[#allocation10 + $0x1bc] ss:$24 sps:$4 sm:$0xff]  }
 0x180   :  { %1058 = vmatprep.subr.bf16.mxu1 %v2667_v20  ;;  %v2755_v20 = vld [vmem:[#allocation10 + $0x1b8] ss:$24 sps:$4 sm:$0xff]  }
 0x183   :  { %1059 = vmatpush2.bf16.msra.mxu1 %v2665_v24  ;;  %v2760_v24 = vld [vmem:[#allocation10 + $0x184] ss:$24 sps:$4 sm:$0xff]  }
 0x184   :  { %1826 = vmatprep.subr.bf16.mxu1 %v2673_v28  ;;  %v2766_v28 = vld [vmem:[#allocation10 + $0x164] ss:$24 sps:$4 sm:$0xff]  }
 0x186   :  { %1061 = vmatmul.mubr.bf16.vlgmr.msra.gmra.mxu1 %v3247_v45  ;;  %v2700_v45 = vld [vmem:[#allocation10 + $0x64] ss:$24 sps:$4 sm:$0xff]  }
 0x187   :  { %1070 = vmatprep.mubr.bf16.mxu1 %v410_v58  ;;  %1827 = vmatpush1.bf16.msra.mxu1 %v2671_v27  ;;  %v2716_v58 = vld [vmem:[#allocation10 + $0x2d0] ss:$24 sps:$4 sm:$0xff]  }
 0x188   :  { %1828 = vmatprep.subr.bf16.mxu1 %v2679_v30  ;;  %1783 = vmatprep.subr.bf16.mxu0 %v2700_v45  ;;  %v2761_v27 = vld [vmem:[#allocation10 + $0x188] ss:$24 sps:$4 sm:$0xff]  }
 0x189   :  { %1784 = vmatpush1.bf16.msra.mxu0 %v2698_v47 }
 0x18a   :  { %1785 = vmatprep.subr.bf16.mxu0 %v2706_v49 }
 0x18b   :  { %1829 = vmatpush1.bf16.msra.mxu1 %v2677_v32 }
 0x18c   :  { %1830 = vmatprep.subr.bf16.mxu1 %v2685_v34  ;;  %v419_v34 = vrot.slane %v406_v33, %v3240_v22 }
 0x18d   :  { %1786 = vmatpush1.bf16.msra.mxu0 %v2704_v51 }
 0x18e   :  { %1071 = vmatmul.mubr.bf16.gmra.mxu1 %v3251_v57  ;;  %1787 = vmatprep.subr.bf16.mxu0 %v2712_v53  ;;  %v2718_v57 = vld [vmem:[#allocation10 + $0x2d4] ss:$24 sps:$4 sm:$0xff]  }
 0x18f   :  { %1831 = vmatpush1.bf16.msra.mxu1 %v2683_v36 }
 0x190   :  { %1832 = vmatprep.subr.bf16.mxu1 %v2691_v38  ;;  %v415_v38 = vrot.slane %v406_v33, %v3243_v23 }
 0x191   :  { %1788 = vmatpush1.bf16.msra.mxu0 %v2710_v55 }
 0x192   :  { %1789 = vmatprep.subr.bf16.mxu0 %v2718_v57 }
 0x193   :  { %1833 = vmatpush1.bf16.msra.mxu1 %v2689_v40  ;;  %v426_v40 = vsub.s32 3, %v3237_v21 }
 0x194   :  { %1834 = vmatprep.subr.bf16.mxu1 %v2697_v42 }
 0x195   :  { %1790 = vmatpush2.bf16.msra.mxu0 %v2716_v58 }
 0x196   :  { %1791 = vmatprep.subr.bf16.mxu0 %v2724_v61 }
 0x197   :  { %1835 = vmatpush1.bf16.msra.mxu1 %v2695_v44  ;;  %v422_v44 = vsub.s32 2, %v3237_v21 }
 0x198   :  { %1836 = vmatprep.subr.bf16.mxu1 %v2703_v46  ;;  %v427_v46 = vrot.slane %v406_v33, %v426_v40 }
 0x199   :  { %1792 = vmatpush2.bf16.msra.mxu0 %v2722_v62  ;;  %v423_v51 = vrot.slane %v406_v33, %v422_v44 }
 0x19a   :  { %1793 = vmatprep.subr.bf16.mxu0 %v2730_v1 }
 0x19b   :  { %1837 = vmatpush1.bf16.msra.mxu1 %v2701_v48 }
 0x19c   :  { %1838 = vmatprep.subr.bf16.mxu1 %v2709_v50 }
 0x19d   :  { %1794 = vmatpush2.bf16.msra.mxu0 %v2728_v2 }
 0x19e   :  { %1795 = vmatprep.subr.bf16.mxu0 %v2736_v5 }
 0x19f   :  { %1839 = vmatpush1.bf16.msra.mxu1 %v2707_v52 }
 0x1a0   :  { %1840 = vmatprep.subr.bf16.mxu1 %v2715_v54 }
 0x1a1   :  { %1796 = vmatpush2.bf16.msra.mxu0 %v2734_v6 }
 0x1a2   :  { %1797 = vmatprep.subr.bf16.mxu0 %v2742_v9 }
 0x1a3   :  { %1841 = vmatpush1.bf16.msra.mxu1 %v2713_v56 }
 0x1a4   :  { %1842 = vmatprep.subr.bf16.mxu1 %v2721_v59 }
 0x1a5   :  { %1798 = vmatpush2.bf16.msra.mxu0 %v2740_v10 }
 0x1a6   :  { %1799 = vmatprep.subr.bf16.mxu0 %v2748_v13 }
 0x1a7   :  { %1843 = vmatpush2.bf16.msra.mxu1 %v2719_v60 }
 0x1a8   :  { %1844 = vmatprep.subr.bf16.mxu1 %v2727_v63 }
 0x1a9   :  { %1800 = vmatpush2.bf16.msra.mxu0 %v2746_v14 }
 0x1aa   :  { %1801 = vmatprep.subr.bf16.mxu0 %v2754_v17 }
 0x1ab   :  { %1845 = vmatpush2.bf16.msra.mxu1 %v2725_v0  ;;  %v430_v0 = vsub.s32 4, %v3237_v21 }
 0x1ac   :  { %1846 = vmatprep.subr.bf16.mxu1 %v2733_v3 }
 0x1ad   :  { %1802 = vmatpush2.bf16.msra.mxu0 %v2752_v18  ;;  %v431_v9 = vrot.slane %v406_v33, %v430_v0 }
 0x1ae   :  { %1803 = vmatprep.subr.bf16.mxu0 %v2760_v24 }
 0x1af   :  { %1847 = vmatpush2.bf16.msra.mxu1 %v2731_v4  ;;  %v434_v4 = vsub.s32 5, %v3237_v21 }
 0x1b0   :  { %1848 = vmatprep.subr.bf16.mxu1 %v2739_v7 }
 0x1b1   :  { %1804 = vmatpush2.bf16.msra.mxu0 %v2758_v25  ;;  %v435_v14 = vrot.slane %v406_v33, %v434_v4 }
 0x1b2   :  { %1879 = vmatprep.subr.bf16.mxu0 %v2766_v28 }
 0x1b3   :  { %1849 = vmatpush2.bf16.msra.mxu1 %v2737_v8 }
 0x1b4   :  { %1850 = vmatprep.subr.bf16.mxu1 %v2745_v11 }
 0x1b7   :  { %1851 = vmatpush2.bf16.msra.mxu1 %v2743_v12 }
 0x1b8   :  { %1852 = vmatprep.subr.bf16.mxu1 %v2751_v15 }
 0x1bb   :  { %1853 = vmatpush2.bf16.msra.mxu1 %v2749_v16 }
 0x1bc   :  { %1854 = vmatprep.subr.bf16.mxu1 %v2757_v19 }
 0x1bf   :  { %1855 = vmatpush2.bf16.msra.mxu1 %v2755_v20 }
 0x1c0   :  { %1856 = vmatprep.subr.bf16.mxu1 %v2763_v26 }
 0x1c3   :  { %1857 = vmatpush2.bf16.msra.mxu1 %v2761_v27 }
 0x206   :  { %v956_v29 = vpop.f32.mrf.mxu1  ;;  %v1009_v31 = vpop.f32.mrf.mxu0 }
 0x207   :  { %v957_v48 = vadd.f32 %v956_v29, %v415_v38  ;;  %v1010_v62 = vadd.f32 %v1009_v31, %v423_v51 }
 0x208   :  { %v958_v30 = vpop.f32.mrf.mxu1  ;;  %v1011_v35 = vpop.f32.mrf.mxu0 }
 0x209   :  { %v959_v39 = vadd.f32 %v958_v30, %v419_v34  ;;  %v1012_v52 = vadd.f32 %v1011_v35, %v427_v46 }
 0x20a   :  { %v960_v32 = vpop.f32.mrf.mxu1  ;;  %v1013_v41 = vpop.f32.mrf.mxu0 }
 0x20b   :  { %v961_v42 = vadd.f32 %v960_v32, %v415_v38  ;;  %2828 = vtanh.f32 %v959_v39  ;;  %v1014_v53 = vadd.f32 %v1013_v41, %v423_v51 }
 0x20c   :  { %v962_v36 = vpop.f32.mrf.mxu1  ;;  %v1015_v47 = vpop.f32.mrf.mxu0 }
 0x20d   :  { %v963_v45 = vadd.f32 %v962_v36, %v419_v34  ;;  %2830 = vtanh.f32 %v961_v42  ;;  %v1016_v54 = vadd.f32 %v1015_v47, %v427_v46 }
 0x20e   :  { %v966_v37 = vpop.f32.mrf.mxu1  ;;  %v1019_v50 = vpop.f32.mrf.mxu0 }
 0x20f   :  { %2832 = vtanh.f32 %v963_v45  ;;  %v967_v60 = vadd.f32 %v966_v37, %v415_v38  ;;  %v1020_v11 = vadd.f32 %v1019_v50, %v423_v51 }
 0x210   :  { %v968_v43 = vpop.f32.mrf.mxu1  ;;  %2834 = vtanh.f32 %v957_v48  ;;  %v1021_v56 = vpop.f32.mrf.mxu0 }
 0x211   :  { %v969_v57 = vadd.f32 %v968_v43, %v419_v34  ;;  %2836 = vtanh.f32 %v1012_v52  ;;  %v1022_v3 = vadd.f32 %v1021_v56, %v427_v46 }
 0x212   :  { %v970_v49 = vpop.f32.mrf.mxu1  ;;  %2838 = vtanh.f32 %v1014_v53  ;;  %v1023_v61 = vpop.f32.mrf.mxu0 }
 0x213   :  { %v971_v58 = vadd.f32 %v970_v49, %v415_v38  ;;  %2840 = vtanh.f32 %v1016_v54  ;;  %v1024_v7 = vadd.f32 %v1023_v61, %v423_v51 }
 0x214   :  { %v972_v55 = vpop.f32.mrf.mxu1  ;;  %2842 = vtanh.f32 %v969_v57  ;;  %v1025_v1 = vpop.f32.mrf.mxu0 }
 0x215   :  { %v973_v59 = vadd.f32 %v972_v55, %v419_v34  ;;  %2844 = vtanh.f32 %v971_v58  ;;  %v1026_v8 = vadd.f32 %v1025_v1, %v427_v46 }
 0x217   :  { %2846 = vtanh.f32 %v973_v59 }
 0x218   :  { %v2829_v63 = vpop.eup %2828  ;;  %2848 = vtanh.f32 %v967_v60 }
 0x219   :  { %2850 = vtanh.f32 %v1010_v62  ;;  %v1090_v6 = vadd.f32 1.0, %v2829_v63 }
 0x21a   :  { %v2831_v2 = vpop.eup %2830  ;;  %2852 = vtanh.f32 %v1022_v3 }
 0x21b   :  { %v1091_v10 = vadd.f32 1.0, %v2831_v2  ;;  %v1098_v15 = vmul.f32 0.5, %v1090_v6  ;;  %2854 = vtanh.f32 %v1024_v7 }
 0x21c   :  { %v2833_v5 = vpop.eup %2832  ;;  %2856 = vtanh.f32 %v1026_v8 }
 0x21d   :  { %v2835_v12 = vpop.eup %2834  ;;  %v1092_v13 = vadd.f32 1.0, %v2833_v5  ;;  %v1099_v24 = vmul.f32 0.5, %v1091_v10  ;;  %2858 = vtanh.f32 %v1020_v11 }
 0x21e   :  { %v2837_v17 = vpop.eup %2836  ;;  %v1089_v20 = vadd.f32 1.0, %v2835_v12 }
 0x21f   :  { %v2839_v19 = vpop.eup %2838  ;;  %v1100_v27 = vmul.f32 0.5, %v1092_v13  ;;  %v1138_v30 = vmul.f32 %v2837_v17, %v1098_v15 }
 0x220   :  { %v2841_v26 = vpop.eup %2840  ;;  %v1097_v35 = vmul.f32 0.5, %v1089_v20  ;;  %v1139_v36 = vmul.f32 %v2839_v19, %v1099_v24 }
 0x221   :  { %v2843_v29 = vpop.eup %2842  ;;  %v1140_v39 = vmul.f32 %v2841_v26, %v1100_v27 }
 0x222   :  { %v2845_v32 = vpop.eup %2844  ;;  %v1094_v41 = vadd.f32 1.0, %v2843_v29 }
 0x223   :  { %v1095_v43 = vadd.f32 1.0, %v2845_v32 }
 0x224   :  { %v2847_v34 = vpop.eup %2846  ;;  %v1102_v52 = vmul.f32 0.5, %v1094_v41  ;;  %v2769_v41 = vld [vmem:[#allocation10 + $0x134] ss:$24 sps:$4 sm:$0xff]  }
 0x225   :  { %v2849_v38 = vpop.eup %2848  ;;  %v1096_v47 = vadd.f32 1.0, %v2847_v34  ;;  %v1103_v55 = vmul.f32 0.5, %v1095_v43 }
 0x226   :  { %v2851_v46 = vpop.eup %2850  ;;  %v1093_v50 = vadd.f32 1.0, %v2849_v38 }
 0x227   :  { %v1137_v49 = vmul.f32 %v2851_v46, %v1097_v35  ;;  %v2853_v54 = vpop.eup %2852  ;;  %v1104_v58 = vmul.f32 0.5, %v1096_v47 }
 0x228   :  { %v2855_v57 = vpop.eup %2854  ;;  %v1101_v61 = vmul.f32 0.5, %v1093_v50  ;;  %v1142_v1 = vmul.f32 %v2853_v54, %v1102_v52  ;;  %v2767_v50 = vld [vmem:[#allocation10 + $0x130] ss:$24 sps:$4 sm:$0xff]   ;;  %v2772_v52 = vld [vmem:[#allocation10 + $0x104] ss:$24 sps:$4 sm:$0xff]  }
 0x229   :  { %v2857_v60 = vpop.eup %2856  ;;  %v1143_v3 = vmul.f32 %v2855_v57, %v1103_v55 }
 0x22a   :  { %v2859_v63 = vpop.eup %2858  ;;  %v1144_v6 = vmul.f32 %v2857_v60, %v1104_v58 }
 0x22b   :  { %v1141_v8 = vmul.f32 %v2859_v63, %v1101_v61  ;;  %v2775_v61 = vld [vmem:[#allocation10 + $0xd4] ss:$24 sps:$4 sm:$0xff]   ;;  %v2778_v63 = vld [vmem:[#allocation10 + $0xa4] ss:$24 sps:$4 sm:$0xff]  }
 0x246   :  { %v1062_v16 = vpop.f32.mrf.mxu1 }
 0x247   :  { %v1063_v18 = vadd.f32 %v1062_v16, %v431_v9 }
 0x248   :  { %v1064_v25 = vpop.f32.mrf.mxu1 }
 0x249   :  { %v1065_v28 = vadd.f32 %v1064_v25, %v435_v14  ;;  %2860 = vtanh.f32 %v1063_v18 }
 0x24a   :  { %v1066_v31 = vpop.f32.mrf.mxu1 }
 0x24b   :  { %2862 = vtanh.f32 %v1065_v28  ;;  %v1067_v33 = vadd.f32 %v1066_v31, %v431_v9 }
 0x24c   :  { %v1068_v37 = vpop.f32.mrf.mxu1 }
 0x24d   :  { %2864 = vtanh.f32 %v1067_v33  ;;  %v1069_v42 = vadd.f32 %v1068_v37, %v435_v14  ;;  %v2764_v37 = vld [vmem:[#allocation10 + $0x160] ss:$24 sps:$4 sm:$0xff]  }
 0x24e   :  { %2866 = vtanh.f32 %v1138_v30  ;;  %v1072_v45 = vpop.f32.mrf.mxu1 }
 0x24f   :  { %2868 = vtanh.f32 %v1069_v42  ;;  %v1073_v48 = vadd.f32 %v1072_v45, %v431_v9 }
 0x250   :  { %2870 = vtanh.f32 %v1139_v36  ;;  %v1074_v51 = vpop.f32.mrf.mxu1 }
 0x251   :  { %2872 = vtanh.f32 %v1140_v39  ;;  %v1075_v53 = vadd.f32 %v1074_v51, %v435_v14 }
 0x252   :  { %2874 = vtanh.f32 %v1073_v48  ;;  %v1076_v56 = vpop.f32.mrf.mxu1 }
 0x253   :  { %2876 = vtanh.f32 %v1075_v53  ;;  %v1077_v59 = vadd.f32 %v1076_v56, %v431_v9 }
 0x254   :  { %2878 = vtanh.f32 %v1137_v49  ;;  %v1078_v62 = vpop.f32.mrf.mxu1 }
 0x255   :  { %2880 = vtanh.f32 %v1077_v59  ;;  %v1079_v2 = vadd.f32 %v1078_v62, %v435_v14  ;;  %v2770_v59 = vld [vmem:[#allocation10 + $0x100] ss:$24 sps:$4 sm:$0xff]   ;;  %v2773_v62 = vld [vmem:[#allocation10 + $0xd0] ss:$24 sps:$4 sm:$0xff]  }
 0x256   :  { %v2861_v5 = vpop.eup %2860 }
 0x257   :  { %2882 = vtanh.f32 %v1079_v2  ;;  %v1121_v12 = vadd.f32 1.0, %v2861_v5  ;;  %v2781_v2 = vld [vmem:[#allocation10 + $0x74] ss:$24 sps:$4 sm:$0xff]   ;;  %v2784_v5 = vld [vmem:[#allocation10 + $0x44] ss:$24 sps:$4 sm:$0xff]  }
 0x258   :  { %v2863_v7 = vpop.eup %2862  ;;  %2884 = vtanh.f32 %v1142_v1  ;;  %v2776_v1 = vld [vmem:[#allocation10 + $0xa0] ss:$24 sps:$4 sm:$0xff]  }
 0x259   :  { %v1122_v10 = vadd.f32 1.0, %v2863_v7  ;;  %2886 = vtanh.f32 %v1143_v3  ;;  %v1129_v20 = vmul.f32 0.5, %v1121_v12  ;;  %v2779_v3 = vld [vmem:[#allocation10 + $0x70] ss:$24 sps:$4 sm:$0xff]   ;;  %v2787_v7 = vld [vmem:[#allocation10 + $0x14] ss:$24 sps:$4 sm:$0xff]  }
 0x25a   :  { %v2865_v11 = vpop.eup %2864  ;;  %2888 = vtanh.f32 %v1144_v6  ;;  %v2782_v6 = vld [vmem:[#allocation10 + $0x40] ss:$24 sps:$4 sm:$0xff]   ;;  %v2793_v12 = vld [vmem:[#allocation10 + $0x2b4] ss:$24 sps:$4 sm:$0xff]  }
 0x25b   :  { %v2867_v9 = vpop.eup %2866  ;;  %v1123_v13 = vadd.f32 1.0, %v2865_v11  ;;  %2890 = vtanh.f32 %v1141_v8  ;;  %v1130_v17 = vmul.f32 0.5, %v1122_v10  ;;  %v2785_v8 = vld [vmem:[#allocation10 + $0x10] ss:$24 sps:$4 sm:$0xff]   ;;  %v2790_v10 = vld [vmem:[#allocation10 + $0x2e4] ss:$24 sps:$4 sm:$0xff]  }
 0x25c   :  { %v2869_v15 = vpop.eup %2868  ;;  %v2788_v11 = vld [vmem:[#allocation10 + $0x2e0] ss:$24 sps:$4 sm:$0xff]  }
 0x25d   :  { %v2871_v16 = vpop.eup %2870  ;;  %v1131_v18 = vmul.f32 0.5, %v1123_v13  ;;  %v1124_v14 = vadd.f32 1.0, %v2869_v15  ;;  %v1154_v30 = vmul.f32 %v2867_v9, %v1130_v17  ;;  %v2791_v9 = vld [vmem:[#allocation10 + $0x2b0] ss:$24 sps:$4 sm:$0xff]   ;;  %v2796_v13 = vld [vmem:[#allocation10 + $0x284] ss:$24 sps:$4 sm:$0xff]  }
 0x25e   :  { %v2873_v19 = vpop.eup %2872  ;;  %v2794_v15 = vld [vmem:[#allocation10 + $0x280] ss:$24 sps:$4 sm:$0xff]   ;;  %v2797_v17 = vld [vmem:[#allocation10 + $0x250] ss:$24 sps:$4 sm:$0xff]  }
 0x25f   :  { %v2875_v24 = vpop.eup %2874  ;;  %v1132_v25 = vmul.f32 0.5, %v1124_v14  ;;  %v1155_v27 = vmul.f32 %v2871_v16, %v1131_v18  ;;  %v2799_v16 = vld [vmem:[#allocation10 + $0x254] ss:$24 sps:$4 sm:$0xff]   ;;  %v2802_v18 = vld [vmem:[#allocation10 + $0x224] ss:$24 sps:$4 sm:$0xff]  }
 0x260   :  { %v2877_v26 = vpop.eup %2876  ;;  %v1125_v34 = vadd.f32 1.0, %v2875_v24  ;;  %v2800_v14 = vld [vmem:[#allocation10 + $0x220] ss:$24 sps:$4 sm:$0xff]   ;;  %v2808_v24 = vld [vmem:[#allocation10 + $0x1c4] ss:$24 sps:$4 sm:$0xff]  }
 0x261   :  { %v2879_v28 = vpop.eup %2878  ;;  %v1126_v29 = vadd.f32 1.0, %v2877_v26  ;;  %v1156_v31 = vmul.f32 %v2873_v19, %v1132_v25  ;;  %v2805_v19 = vld [vmem:[#allocation10 + $0x1f4] ss:$24 sps:$4 sm:$0xff]   ;;  %v2806_v25 = vld [vmem:[#allocation10 + $0x1c0] ss:$24 sps:$4 sm:$0xff]  }
 0x262   :  { %v2881_v32 = vpop.eup %2880  ;;  %v1153_v33 = vmul.f32 %v2879_v28, %v1129_v20  ;;  %v1133_v47 = vmul.f32 0.5, %v1125_v34  ;;  %v2803_v20 = vld [vmem:[#allocation10 + $0x1f0] ss:$24 sps:$4 sm:$0xff]   ;;  %v2811_v26 = vld [vmem:[#allocation10 + $0x194] ss:$24 sps:$4 sm:$0xff]   ;;  %v2812_v28 = vld [vmem:[#allocation13 + $0x78] sm:$0xff]  }
 0x263   :  { %v1127_v35 = vadd.f32 1.0, %v2881_v32  ;;  %v1259_v36 = vpack.c.bf16 %v1156_v31, %v1154_v30  ;;  %v1134_v42 = vmul.f32 0.5, %v1126_v29  ;;  %v2813_v29 = vld [vmem:[#allocation13 + $0x38] sm:$0xff]   ;;  %2455 = vmatprep.subr.bf16.mxu1 %v2812_v28  ;;  %v2814_v30 = vld [vmem:[#allocation13 + $0x70] sm:$0xff]   ;;  %v2816_v32 = vld [vmem:[#allocation13 + $0x68] sm:$0xff]  }
 0x264   :  { %v2883_v38 = vpop.eup %2882  ;;  %v3274_v39 = vpack.c.bf16 %v1155_v27, %v1153_v33  ;;  %v2809_v27 = vld [vmem:[#allocation10 + $0x190] ss:$24 sps:$4 sm:$0xff]   ;;  %v2815_v31 = vld [vmem:[#allocation13 + $0x30] sm:$0xff]  }
 0x265   :  { %v1135_v43 = vmul.f32 0.5, %v1127_v35  ;;  %v1128_v45 = vadd.f32 1.0, %v2883_v38  ;;  %1805 = vmatprep.mubr.bf16.mxu0 %v1259_v36  ;;  %1858 = vmatprep.mubr.bf16.mxu1 %v1259_v36  ;;  %v2885_v46 = vpop.eup %2884  ;;  %v2817_v33 = vld [vmem:[#allocation13 + $0x28] sm:$0xff]   ;;  %v2818_v34 = vld [vmem:[#allocation13 + $0x60] sm:$0xff]   ;;  %v2822_v38 = vld [vmem:[#allocation13 + $0x50] sm:$0xff]  }
 0x266   :  { %1806 = vmatmul.mubr.bf16.vlgmr.msra.gmra.mxu0 %v3274_v39  ;;  %1859 = vmatmul.mubr.bf16.vlgmr.msra.gmra.mxu1 %v3274_v39  ;;  %v2887_v48 = vpop.eup %2886  ;;  %v1158_v55 = vmul.f32 %v2885_v46, %v1134_v42  ;;  %v2819_v35 = vld [vmem:[#allocation13 + $0x20] sm:$0xff]   ;;  %v2825_v42 = vld [vmem:[#allocation13 + $0x8] sm:$0xff]  }
 0x267   :  { %v1136_v49 = vmul.f32 0.5, %v1128_v45  ;;  %1880 = vmatpush1.bf16.msra.mxu0 %v2764_v37  ;;  %v2889_v51 = vpop.eup %2888  ;;  %v1159_v53 = vmul.f32 %v2887_v48, %v1135_v43  ;;  %2456 = vmatpush3.bf16.msra.mxu1 %v2813_v29  ;;  %v2821_v37 = vld [vmem:[#allocation13 + $0x18] sm:$0xff]   ;;  %v2826_v43 = vld [vmem:[#allocation13 + $0x40] sm:$0xff]  }
 0x268   :  { %1881 = vmatprep.subr.bf16.mxu0 %v2769_v41  ;;  %v2891_v54 = vpop.eup %2890  ;;  %2457 = vmatprep.subr.bf16.mxu1 %v2814_v30  ;;  %v2824_v41 = vld [vmem:[#allocation13 + $0x48] sm:$0xff]   ;;  %v2827_v45 = vld [vmem:[#allocation13] sm:$0xff]  }
 0x269   :  { %v1160_v56 = vmul.f32 %v2889_v51, %v1136_v49  ;;  %v1157_v57 = vmul.f32 %v2891_v54, %v1133_v47  ;;  %v1257_v51 = vld [vmem:[#allocation11] sm:$0x3f] }
 0x26a   :  { %v1286_v28 = vrot.slane %v1257_v51, %v434_v4 }
 0x26b   :  { %1882 = vmatpush1.bf16.msra.mxu0 %v2767_v50  ;;  %v1261_v58 = vpack.c.bf16 %v1160_v56, %v1158_v55  ;;  %v1260_v60 = vpack.c.bf16 %v1159_v53, %v1157_v57  ;;  %2458 = vmatpush3.bf16.msra.mxu1 %v2815_v31  ;;  %v1266_v55 = vrot.slane %v1257_v51, %v3243_v23 }
 0x26c   :  { %1883 = vmatprep.subr.bf16.mxu0 %v2772_v52  ;;  %2459 = vmatprep.subr.bf16.mxu1 %v2816_v32  ;;  %v1270_v52 = vrot.slane %v1257_v51, %v3240_v22  ;;  %v1274_v22 = vrot.slane %v1257_v51, %v422_v44 }
 0x26d   :  { %1815 = vmatprep.mubr.bf16.mxu0 %v1261_v58  ;;  %1868 = vmatprep.mubr.bf16.mxu1 %v1261_v58 }
 0x26e   :  { %1816 = vmatmul.mubr.bf16.gmra.mxu0 %v1260_v60  ;;  %1869 = vmatmul.mubr.bf16.gmra.mxu1 %v1260_v60 }
 0x26f   :  { %1884 = vmatpush1.bf16.msra.mxu0 %v2770_v59  ;;  %1911 = vmatprep.mubr.bf16.mxu0 %v1259_v36  ;;  %v2820_v36 = vld [vmem:[#allocation13 + $0x58] sm:$0xff]  }
 0x270   :  { %1885 = vmatprep.subr.bf16.mxu0 %v2775_v61  ;;  %2460 = vmatpush3.bf16.msra.mxu1 %v2817_v33  ;;  %v1278_v61 = vrot.slane %v1257_v51, %v426_v40 }
 0x271   :  { %2461 = vmatprep.subr.bf16.mxu1 %v2818_v34 }
 0x273   :  { %1886 = vmatpush1.bf16.msra.mxu0 %v2773_v62 }
 0x274   :  { %1887 = vmatprep.subr.bf16.mxu0 %v2778_v63  ;;  %2462 = vmatpush3.bf16.msra.mxu1 %v2819_v35 }
 0x275   :  { %2463 = vmatprep.subr.bf16.mxu1 %v2820_v36 }
 0x277   :  { %1888 = vmatpush1.bf16.msra.mxu0 %v2776_v1 }
 0x278   :  { %1889 = vmatprep.subr.bf16.mxu0 %v2781_v2  ;;  %2464 = vmatpush3.bf16.msra.mxu1 %v2821_v37 }
 0x279   :  { %2465 = vmatprep.subr.bf16.mxu1 %v2822_v38 }
 0x27b   :  { %1890 = vmatpush1.bf16.msra.mxu0 %v2779_v3 }
 0x27c   :  { %1891 = vmatprep.subr.bf16.mxu0 %v2784_v5 }
 0x27f   :  { %1892 = vmatpush1.bf16.msra.mxu0 %v2782_v6 }
 0x280   :  { %1893 = vmatprep.subr.bf16.mxu0 %v2787_v7 }
 0x283   :  { %1894 = vmatpush1.bf16.msra.mxu0 %v2785_v8 }
 0x284   :  { %1895 = vmatprep.subr.bf16.mxu0 %v2790_v10 }
 0x287   :  { %1896 = vmatpush2.bf16.msra.mxu0 %v2788_v11 }
 0x288   :  { %1897 = vmatprep.subr.bf16.mxu0 %v2793_v12 }
 0x28b   :  { %1898 = vmatpush2.bf16.msra.mxu0 %v2791_v9 }
 0x28c   :  { %1899 = vmatprep.subr.bf16.mxu0 %v2796_v13 }
 0x28f   :  { %1900 = vmatpush2.bf16.msra.mxu0 %v2794_v15 }
 0x290   :  { %1901 = vmatprep.subr.bf16.mxu0 %v2799_v16 }
 0x293   :  { %1902 = vmatpush2.bf16.msra.mxu0 %v2797_v17 }
 0x294   :  { %1903 = vmatprep.subr.bf16.mxu0 %v2802_v18 }
 0x297   :  { %1904 = vmatpush2.bf16.msra.mxu0 %v2800_v14 }
 0x298   :  { %1905 = vmatprep.subr.bf16.mxu0 %v2805_v19  ;;  %v1282_v19 = vrot.slane %v1257_v51, %v430_v0 }
 0x29b   :  { %1906 = vmatpush2.bf16.msra.mxu0 %v2803_v20 }
 0x29c   :  { %1907 = vmatprep.subr.bf16.mxu0 %v2808_v24 }
 0x29f   :  { %1908 = vmatpush2.bf16.msra.mxu0 %v2806_v25 }
 0x2a0   :  { %1909 = vmatprep.subr.bf16.mxu0 %v2811_v26 }
 0x2a3   :  { %1910 = vmatpush2.bf16.msra.mxu0 %v2809_v27 }
 0x2a6   :  { %1912 = vmatmul.mubr.bf16.vlgmr.msra.gmra.mxu0 %v3274_v39  ;;  %v2823_v39 = vld [vmem:[#allocation13 + $0x10] sm:$0xff]  }
 0x2a7   :  { %1921 = vmatprep.mubr.bf16.mxu0 %v1261_v58  ;;  %2466 = vmatpush3.bf16.msra.mxu1 %v2823_v39 }
 0x2a8   :  { %2467 = vmatprep.subr.bf16.mxu1 %v2824_v41 }
 0x2ab   :  { %2468 = vmatpush3.bf16.msra.mxu1 %v2825_v42 }
 0x2ac   :  { %2469 = vmatprep.subr.bf16.mxu1 %v2826_v43 }
 0x2ae   :  { %1922 = vmatmul.mubr.bf16.gmra.mxu0 %v1260_v60 }
 0x2af   :  { %2470 = vmatpush3.bf16.msra.mxu1 %v2827_v45 }
 0x326   :  { %v1807_v46 = vpop.f32.mrf.mxu0  ;;  %v1860_v49 = vpop.f32.mrf.mxu1 }
 0x327   :  { %v1808_v63 = vadd.f32 %v1807_v46, %v1266_v55  ;;  %v1861_v12 = vadd.f32 %v1860_v49, %v1274_v22 }
 0x328   :  { %v1809_v47 = vpop.f32.mrf.mxu0  ;;  %v1862_v53 = vpop.f32.mrf.mxu1 }
 0x329   :  { %v1810_v56 = vadd.f32 %v1809_v47, %v1270_v52  ;;  %v1863_v2 = vadd.f32 %v1862_v53, %v1278_v61 }
 0x32a   :  { %v1811_v48 = vpop.f32.mrf.mxu0  ;;  %v1864_v57 = vpop.f32.mrf.mxu1 }
 0x32b   :  { %v1812_v58 = vadd.f32 %v1811_v48, %v1266_v55  ;;  %2892 = vtanh.f32 %v1810_v56  ;;  %v1865_v23 = vadd.f32 %v1864_v57, %v1274_v22 }
 0x32c   :  { %v1813_v50 = vpop.f32.mrf.mxu0  ;;  %v1866_v62 = vpop.f32.mrf.mxu1 }
 0x32d   :  { %v1814_v60 = vadd.f32 %v1813_v50, %v1270_v52  ;;  %2894 = vtanh.f32 %v1812_v58  ;;  %v1867_v5 = vadd.f32 %v1866_v62, %v1278_v61 }
 0x32e   :  { %v1817_v54 = vpop.f32.mrf.mxu0  ;;  %v1870_v3 = vpop.f32.mrf.mxu1 }
 0x32f   :  { %2896 = vtanh.f32 %v1814_v60  ;;  %v1818_v11 = vadd.f32 %v1817_v54, %v1266_v55  ;;  %v1871_v17 = vadd.f32 %v1870_v3, %v1274_v22 }
 0x330   :  { %v1819_v59 = vpop.f32.mrf.mxu0  ;;  %2898 = vtanh.f32 %v1808_v63  ;;  %v1872_v8 = vpop.f32.mrf.mxu1 }
 0x331   :  { %v1820_v7 = vadd.f32 %v1819_v59, %v1270_v52  ;;  %2900 = vtanh.f32 %v1863_v2  ;;  %v1873_v14 = vadd.f32 %v1872_v8, %v1278_v61 }
 0x332   :  { %v1821_v1 = vpop.f32.mrf.mxu0  ;;  %2902 = vtanh.f32 %v1865_v23  ;;  %v1874_v9 = vpop.f32.mrf.mxu1 }
 0x333   :  { %v1822_v10 = vadd.f32 %v1821_v1, %v1266_v55  ;;  %2904 = vtanh.f32 %v1867_v5  ;;  %v1875_v24 = vadd.f32 %v1874_v9, %v1274_v22 }
 0x334   :  { %v1823_v6 = vpop.f32.mrf.mxu0  ;;  %2906 = vtanh.f32 %v1820_v7  ;;  %v1876_v18 = vpop.f32.mrf.mxu1 }
 0x335   :  { %v1824_v40 = vadd.f32 %v1823_v6, %v1270_v52  ;;  %2908 = vtanh.f32 %v1822_v10  ;;  %v1877_v27 = vadd.f32 %v1876_v18, %v1278_v61 }
 0x337   :  { %2910 = vtanh.f32 %v1824_v40 }
 0x338   :  { %v2893_v44 = vpop.eup %2892  ;;  %2912 = vtanh.f32 %v1818_v11 }
 0x339   :  { %2914 = vtanh.f32 %v1861_v12  ;;  %v1941_v16 = vadd.f32 1.0, %v2893_v44 }
 0x33a   :  { %v2895_v13 = vpop.eup %2894  ;;  %2916 = vtanh.f32 %v1871_v17 }
 0x33b   :  { %v1942_v20 = vadd.f32 1.0, %v2895_v13  ;;  %v1949_v29 = vmul.f32 0.5, %v1941_v16  ;;  %2918 = vtanh.f32 %v1873_v14 }
 0x33c   :  { %v2897_v15 = vpop.eup %2896  ;;  %2920 = vtanh.f32 %v1875_v24 }
 0x33d   :  { %v2899_v25 = vpop.eup %2898  ;;  %v1943_v26 = vadd.f32 1.0, %v2897_v15  ;;  %v1950_v35 = vmul.f32 0.5, %v1942_v20  ;;  %2922 = vtanh.f32 %v1877_v27 }
 0x33e   :  { %v2901_v31 = vpop.eup %2900  ;;  %v1940_v34 = vadd.f32 1.0, %v2899_v25 }
 0x33f   :  { %v2903_v33 = vpop.eup %2902  ;;  %v1951_v37 = vmul.f32 0.5, %v1943_v26  ;;  %v1989_v41 = vmul.f32 %v2901_v31, %v1949_v29 }
 0x340   :  { %v2905_v0 = vpop.eup %2904  ;;  %v1948_v45 = vmul.f32 0.5, %v1940_v34  ;;  %v1990_v46 = vmul.f32 %v2903_v33, %v1950_v35 }
 0x341   :  { %v2907_v39 = vpop.eup %2906  ;;  %v1991_v49 = vmul.f32 %v2905_v0, %v1951_v37 }
 0x342   :  { %v2909_v4 = vpop.eup %2908  ;;  %v1945_v50 = vadd.f32 1.0, %v2907_v39 }
 0x343   :  { %v1946_v52 = vadd.f32 1.0, %v2909_v4 }
 0x344   :  { %v2911_v43 = vpop.eup %2910  ;;  %v1953_v60 = vmul.f32 0.5, %v1945_v50 }
 0x345   :  { %v2913_v48 = vpop.eup %2912  ;;  %v1947_v55 = vadd.f32 1.0, %v2911_v43  ;;  %v1954_v62 = vmul.f32 0.5, %v1946_v52 }
 0x346   :  { %v2915_v54 = vpop.eup %2914  ;;  %v1944_v58 = vadd.f32 1.0, %v2913_v48 }
 0x347   :  { %v1988_v57 = vmul.f32 %v2915_v54, %v1948_v45  ;;  %v2917_v1 = vpop.eup %2916  ;;  %v1955_v22 = vmul.f32 0.5, %v1947_v55 }
 0x348   :  { %v2919_v3 = vpop.eup %2918  ;;  %v1952_v23 = vmul.f32 0.5, %v1944_v58  ;;  %v2438_v58 = vld [vmem:[%s3306_s8] ss:$0 sm:$0xff]  ;;  %s3148_s8 = smov [#allocation14]  }
 0x349   :  { %v2921_v6 = vpop.eup %2920  ;;  %v1993_v7 = vmul.f32 %v2919_v3, %v1953_v60  ;;  %s2213_s20 = sshll.u32 %s3148_s8, 4  ;;  %s2214_s20 = int_to_ptr.vmem [resolvable:$true] %s2213_s20 }
 0x34a   :  { %v2923_v10 = vpop.eup %2922  ;;  %v1994_v40 = vmul.f32 %v2921_v6, %v1954_v62  ;;  %v1992_v44 = vmul.f32 %v2917_v1, %v1952_v23  ;;  %s3104_s27 = scalar_lea.vmem %s2214_s20, 512  ;;  %p3109_p8 = scmp.lt.s32.totalorder %s2214_s20, %s2214_s20 }
 0x34b   :  { %v1995_v12 = vmul.f32 %v2923_v10, %v1955_v22  ;;  %p3105_p7 = scmp.ne.s32.totalorder %s2214_s20, %s3104_s27  ;;  %p3110_p9 = scmp.lt.s32.totalorder %s3104_s27, %s3104_s27 }
 0x34d   :  { %p3111_p10 = por %p3110_p9, %p3109_p8 }
 0x34f   :  { %p3112_p11 = pnand %p3111_p10, %p3105_p7 }
 0x366   :  { %v1913_v30 = vpop.f32.mrf.mxu0 }
 0x367   :  { %v1914_v32 = vadd.f32 %v1913_v30, %v1282_v19 }
 0x368   :  { %v1915_v36 = vpop.f32.mrf.mxu0 }
 0x369   :  { %v1916_v38 = vadd.f32 %v1915_v36, %v1286_v28  ;;  %2924 = vtanh.f32 %v1914_v32 }
 0x36a   :  { %v1917_v21 = vpop.f32.mrf.mxu0 }
 0x36b   :  { %2926 = vtanh.f32 %v1916_v38  ;;  %v1918_v42 = vadd.f32 %v1917_v21, %v1282_v19 }
 0x36c   :  { %v1919_v47 = vpop.f32.mrf.mxu0 }
 0x36d   :  { %2928 = vtanh.f32 %v1918_v42  ;;  %v1920_v51 = vadd.f32 %v1919_v47, %v1286_v28 }
 0x36e   :  { %2930 = vtanh.f32 %v1989_v41  ;;  %v1923_v53 = vpop.f32.mrf.mxu0 }
 0x36f   :  { %2932 = vtanh.f32 %v1920_v51  ;;  %v1924_v56 = vadd.f32 %v1923_v53, %v1282_v19 }
 0x370   :  { %2934 = vtanh.f32 %v1990_v46  ;;  %v1925_v59 = vpop.f32.mrf.mxu0 }
 0x371   :  { %2936 = vtanh.f32 %v1991_v49  ;;  %v1926_v61 = vadd.f32 %v1925_v59, %v1286_v28 }
 0x372   :  { %2938 = vtanh.f32 %v1924_v56  ;;  %v1927_v63 = vpop.f32.mrf.mxu0 }
 0x373   :  { %2940 = vtanh.f32 %v1926_v61  ;;  %v1928_v2 = vadd.f32 %v1927_v63, %v1282_v19 }
 0x374   :  { %2942 = vtanh.f32 %v1988_v57  ;;  %v1929_v5 = vpop.f32.mrf.mxu0 }
 0x375   :  { %2944 = vtanh.f32 %v1928_v2  ;;  %v1930_v8 = vadd.f32 %v1929_v5, %v1286_v28 }
 0x376   :  { %v2925_v11 = vpop.eup %2924 }
 0x377   :  { %2946 = vtanh.f32 %v1930_v8  ;;  %v1972_v16 = vadd.f32 1.0, %v2925_v11 }
 0x378   :  { %v2927_v9 = vpop.eup %2926  ;;  %2948 = vtanh.f32 %v1993_v7 }
 0x379   :  { %v1973_v13 = vadd.f32 1.0, %v2927_v9  ;;  %2950 = vtanh.f32 %v1994_v40  ;;  %v1980_v27 = vmul.f32 0.5, %v1972_v16 }
 0x37a   :  { %v2929_v15 = vpop.eup %2928  ;;  %2952 = vtanh.f32 %v1995_v12 }
 0x37b   :  { %v2931_v17 = vpop.eup %2930  ;;  %v1974_v18 = vadd.f32 1.0, %v2929_v15  ;;  %2954 = vtanh.f32 %v1992_v44  ;;  %v1981_v20 = vmul.f32 0.5, %v1973_v13 }
 0x37c   :  { %v2933_v14 = vpop.eup %2932 }
 0x37d   :  { %v2935_v19 = vpop.eup %2934  ;;  %v1982_v24 = vmul.f32 0.5, %v1974_v18  ;;  %v1975_v25 = vadd.f32 1.0, %v2933_v14  ;;  %v2005_v34 = vmul.f32 %v2931_v17, %v1981_v20 }
 0x37e   :  { %v2937_v26 = vpop.eup %2936 }
 0x37f   :  { %v2939_v28 = vpop.eup %2938  ;;  %v1983_v29 = vmul.f32 0.5, %v1975_v25  ;;  %v2006_v31 = vmul.f32 %v2935_v19, %v1982_v24 }
 0x380   :  { %v2941_v30 = vpop.eup %2940  ;;  %v1976_v37 = vadd.f32 1.0, %v2939_v28 }
 0x381   :  { %v2943_v32 = vpop.eup %2942  ;;  %v1977_v33 = vadd.f32 1.0, %v2941_v30  ;;  %v2007_v35 = vmul.f32 %v2937_v26, %v1983_v29 }
 0x382   :  { %v2945_v36 = vpop.eup %2944  ;;  %v2004_v0 = vmul.f32 %v2943_v32, %v1980_v27  ;;  %v1984_v46 = vmul.f32 0.5, %v1976_v37 }
 0x383   :  { %v1978_v38 = vadd.f32 1.0, %v2945_v36  ;;  %v2013_v39 = vpack.c.bf16 %v2007_v35, %v2005_v34  ;;  %v1985_v4 = vmul.f32 0.5, %v1977_v33 }
 0x384   :  { %v2947_v41 = vpop.eup %2946  ;;  %v2012_v21 = vpack.c.bf16 %v2006_v31, %v2004_v0 }
 0x385   :  { %v1986_v42 = vmul.f32 0.5, %v1978_v38  ;;  %v1979_v43 = vadd.f32 1.0, %v2947_v41  ;;  %2183 = vmatprep.mubr.bf16.mxu1 %v2013_v39  ;;  %v2949_v45 = vpop.eup %2948 }
 0x386   :  { %2184 = vmatmul.mubr.bf16.vlgmr.msra.gmra.mxu1 %v2012_v21  ;;  %v2951_v47 = vpop.eup %2950  ;;  %v2009_v52 = vmul.f32 %v2949_v45, %v1985_v4 }
 0x387   :  { %v1987_v48 = vmul.f32 0.5, %v1979_v43  ;;  %v2953_v49 = vpop.eup %2952  ;;  %v2010_v50 = vmul.f32 %v2951_v47, %v1986_v42 }
 0x388   :  { %v2955_v51 = vpop.eup %2954 }
 0x389   :  { %v2011_v53 = vmul.f32 %v2953_v49, %v1987_v48  ;;  %v2008_v54 = vmul.f32 %v2955_v51, %v1984_v46 }
 0x38b   :  { %v2015_v55 = vpack.c.bf16 %v2011_v53, %v2009_v52  ;;  %v2014_v56 = vpack.c.bf16 %v2010_v50, %v2008_v54 }
 0x38d   :  { %2191 = vmatprep.mubr.bf16.mxu1 %v2015_v55 }
 0x38e   :  { %2192 = vmatmul.mubr.bf16.gmra.mxu1 %v2014_v56 }
 0x446   :  { %v2471_v57 = vpop.f32.mrf.mxu1 }
 0x448   :  { %v2472_v59 = vpop.f32.mrf.mxu1 }
 0x449   :  { %v2473_v60 = vadd.f32 %v2472_v59, %v2471_v57 }
 0x44a   :  { %v2474_v61 = vpop.f32.mrf.mxu1 }
 0x44b   :  { %v2186_v62 = vadd.f32 %v2473_v60, %v2438_v58 }
 0x44c   :  { %v2475_v63 = vpop.f32.mrf.mxu1 }
 0x44d   :  { %2956 = vtanh.f32 %v2186_v62  ;;  %v2476_v1 = vadd.f32 %v2475_v63, %v2474_v61 }
 0x44e   :  { %v2477_v22 = vpop.f32.mrf.mxu1 }
 0x44f   :  { %v2189_v2 = vadd.f32 %v2476_v1, %v2438_v58 }
 0x450   :  { %v2478_v3 = vpop.f32.mrf.mxu1 }
 0x451   :  { %2958 = vtanh.f32 %v2189_v2  ;;  %v2479_v23 = vadd.f32 %v2478_v3, %v2477_v22 }
 0x452   :  { %v2480_v5 = vpop.f32.mrf.mxu1 }
 0x453   :  { %v2194_v6 = vadd.f32 %v2479_v23, %v2438_v58 }
 0x454   :  { %v2481_v7 = vpop.f32.mrf.mxu1 }
 0x455   :  { %2960 = vtanh.f32 %v2194_v6  ;;  %v2482_v8 = vadd.f32 %v2481_v7, %v2480_v5 }
 0x457   :  { %v2197_v10 = vadd.f32 %v2482_v8, %v2438_v58 }
 0x459   :  { %2962 = vtanh.f32 %v2197_v10 }
 0x45a   :  { %v2957_v40 = vpop.eup %2956 }
 0x45b   :  { %2204 = vst [vmem:[#allocation14] sm:$0xff] %v2957_v40 }
 0x45e   :  { %v2959_v11 = vpop.eup %2958 }
 0x45f   :  { %2205 = vst [vmem:[#allocation14 + $0x8] sm:$0xff] %v2959_v11 }
 0x462   :  { %v2961_v12 = vpop.eup %2960 }
 0x463   :  { %2206 = vst [vmem:[#allocation14 + $0x10] sm:$0xff] %v2961_v12 }
 0x466   :  { %v2963_v9 = vpop.eup %2962 }
 0x467   :  { %2207 = vst [vmem:[#allocation14 + $0x18] sm:$0xff] %v2963_v9 }
 0x468   :  { %3115 = shalt.err (!%p3112_p11)
}
 0x469   :  { %2219 = dma.vmem_to_hbm [thread:$0]  %s2214_s20, 512, %s3307_s9, [#allocation4], %s3135_s12, %s3135_s12, %s3136_s13  }
 0x46a   :  { %3132 = dma.done.wait [#allocation4], 512  }
 0x46b   :  { %3133 = vsyncadd [#allocation4], 4294966784 }
 0x46c   :  { %2223 = vsyncpa [#allocation3], 1 }
 0x46d   :  { %2224 = vsyncpa [#allocation6], 1 }
 0x46e   :  { %2225 = vsyncpa [#allocation9], 1 }
 0x46f   :  { %2226 = vsyncpa [#allocation12], 1 }
 0x470   :  { %2227 = vsyncpa [#allocation4], 1 }

</bundles_post_ra>
